<compile_context>
chip_gen: v6e
topology: v6e:2x2x1
jax: 0.10.0
libtpu: 0.0.40
codegen_flags: <defaults>
</compile_context>

<pallas_src>
import functools

import jax
import jax.numpy as jnp
from jax import lax
from jax.experimental import pallas as pl
from jax.experimental.pallas import tpu as pltpu


def _convlstm_gates_kernel(w_ref, p_ref, c_ref, h_out_ref, c_out_ref,
                           *, hidden_dim):
    """Fused conv-as-matmul + LSTM gate math for one lane tile.

    Layout: channels on sublanes (M), flattened b*H*W on lanes (N).
      w_ref    : (4*hidden, K_pad)  bf16   conv weight (+ bias column, zero pad)
      p_ref    : (K_pad, Nt)        bf16   im2col patches (+ ones row, zero pad)
      c_ref    : (hidden, Nt)       f32    current cell state
      h_out_ref: (hidden, Nt)       f32
      c_out_ref: (hidden, Nt)       f32
    """
    # One fat MXU matmul, f32 accumulation.  Bias is folded into the
    # contraction via the ones row in p_ref / bias column in w_ref.
    gates = jnp.dot(w_ref[...], p_ref[...],
                    preferred_element_type=jnp.float32)          # (4h, Nt)

    hd = hidden_dim
    # Gate order along sublanes matches torch.split: [i, f, o, g].
    # Per-slice activations: vregs retire per gate, no iota/select overhead.
    i_g = jax.nn.sigmoid(gates[0 * hd:1 * hd, :])
    f_g = jax.nn.sigmoid(gates[1 * hd:2 * hd, :])
    o_g = jax.nn.sigmoid(gates[2 * hd:3 * hd, :])
    g_g = jnp.tanh(gates[3 * hd:4 * hd, :])

    c_cur = c_ref[...]
    c_next = f_g * c_cur + i_g * g_g
    h_next = o_g * jnp.tanh(c_next)

    c_out_ref[...] = c_next.astype(c_out_ref.dtype)
    h_out_ref[...] = h_next.astype(h_out_ref.dtype)


def _pick_n_tile(n_flat):
    """Device-aware lane-tile pick (trace-time Python on static shapes)."""
    n128 = pl.cdiv(n_flat, 128) * 128
    try:
        kind = jax.devices()[0].device_kind.lower()
    except Exception:  # pragma: no cover - defensive, e.g. interpret mode
        kind = ""
    dual_tc = "v7" in kind  # v7x: 2 TensorCores/chip -> keep >= 2 lane tiles
    cap = 1024
    if dual_tc:
        half = pl.cdiv(pl.cdiv(n128, 2), 128) * 128
        return max(128, min(half, cap))
    # v5e/v6e: single TensorCore -> one big tile, grid collapses to (1,)
    return max(128, min(n128, cap))


@functools.partial(jax.jit, static_argnames=("kernel_size", "n_tile"))
def conv_lstm_cell_forward(x_nchw, h_nchw, c_nchw, weight_hwio, bias,
                           kernel_size, n_tile=None):
    """ConvLSTMCell.forward.  Inputs/outputs are NCHW like the PyTorch module.

    x_nchw : (B, input_dim, H, W)
    h_nchw : (B, hidden_dim, H, W)
    c_nchw : (B, hidden_dim, H, W)
    weight_hwio : (kh, kw, input_dim + hidden_dim, 4*hidden_dim)
    bias   : (4*hidden_dim,)
    returns (h_next, c_next), both (B, hidden_dim, H, W), f32.
    """
    kh, kw = kernel_size
    # PyTorch "same" padding (k//2) only preserves spatial size for odd kernels.
    assert kh % 2 == 1 and kw % 2 == 1, "kernel_size must be odd for 'same' padding"

    B, input_dim, H, W = x_nchw.shape
    hidden_dim = h_nchw.shape[1]
    Cin = input_dim + hidden_dim
    K = kh * kw * Cin
    four_h = 4 * hidden_dim
    pad_h, pad_w = kh // 2, kw // 2
    N = B * H * W

    # Pad K (+1 bias/ones row) to the next multiple of 128: full vregs, clean
    # MXU contraction chunks, no masked edge handling.
    K_pad = pl.cdiv(K + 1, 128) * 128

    # ---- layout plumbing (plain JAX, fused by XLA under jit) ---------------
    # im2col with channels-major rows / flattened (b,h,w) columns:
    #   patches[(ky*kw+kx)*Cin + c,  b*H*W + h*W + w] = padded[b, c, h+ky, w+kx]
    combined = jnp.concatenate([x_nchw, h_nchw], axis=1)             # (B, Cin, H, W)
    combined = jnp.pad(combined,
                       ((0, 0), (0, 0), (pad_h, pad_h), (pad_w, pad_w)))
    combined = jnp.transpose(combined, (1, 0, 2, 3))                 # (Cin, B, Hp, Wp)
    taps = [combined[:, :, ky:ky + H, kx:kx + W].reshape(Cin, N)
            for ky in range(kh) for kx in range(kw)]
    patches = jnp.concatenate(
        taps + [jnp.ones((1, N), combined.dtype)], axis=0)           # (K+1, N)
    patches = jnp.pad(patches, ((0, K_pad - (K + 1)), (0, 0)))
    patches = patches.astype(jnp.bfloat16)                           # (K_pad, N)

    # weight HWIO -> (4h, kh, kw, Cin) -> (4h, K); bias folded as column K;
    # zero-pad to K_pad.  Same tap-major K ordering as the patches rows.
    w_t = jnp.transpose(weight_hwio, (3, 0, 1, 2)).reshape(four_h, K)
    w_t = jnp.concatenate([w_t, bias.reshape(four_h, 1)], axis=1)    # (4h, K+1)
    w_t = jnp.pad(w_t, ((0, 0), (0, K_pad - (K + 1))))
    w_t = w_t.astype(jnp.bfloat16)                                   # (4h, K_pad)

    # cell state in channels-major flat layout, f32.
    c_t = jnp.transpose(c_nchw, (1, 0, 2, 3)).reshape(hidden_dim, N)
    c_t = c_t.astype(jnp.float32)

    # Lane tile: device-aware default; caller value rounded UP to 128 multiple.
    if n_tile is None:
        n_tile = _pick_n_tile(N)
    else:
        n_tile = max(128, pl.cdiv(int(n_tile), 128) * 128)

    n_pad = pl.cdiv(N, n_tile) * n_tile
    if n_pad != N:
        patches = jnp.pad(patches, ((0, 0), (0, n_pad - N)))
        c_t = jnp.pad(c_t, ((0, 0), (0, n_pad - N)))
    grid = (n_pad // n_tile,)

    kernel = functools.partial(_convlstm_gates_kernel, hidden_dim=hidden_dim)

    h_t, c_next_t = pl.pallas_call(
        kernel,
        out_shape=(
            jax.ShapeDtypeStruct((hidden_dim, n_pad), jnp.float32),
            jax.ShapeDtypeStruct((hidden_dim, n_pad), jnp.float32),
        ),
        grid_spec=pltpu.PrefetchScalarGridSpec(
            num_scalar_prefetch=0,
            grid=grid,
            in_specs=[
                pl.BlockSpec((four_h, K_pad), lambda j: (0, 0)),         # weight (resident)
                pl.BlockSpec((K_pad, n_tile), lambda j: (0, j)),         # patches tile
                pl.BlockSpec((hidden_dim, n_tile), lambda j: (0, j)),    # c tile
            ],
            out_specs=[
                pl.BlockSpec((hidden_dim, n_tile), lambda j: (0, j)),
                pl.BlockSpec((hidden_dim, n_tile), lambda j: (0, j)),
            ],
        ),
        compiler_params=pltpu.CompilerParams(
            dimension_semantics=("parallel",)),
    )(w_t, patches, c_t)

    # Back to NCHW to match the PyTorch output convention (kept in f32 so the
    # recurrent state is never quantized by the kernel).
    h_next = jnp.transpose(h_t[:, :N].reshape(hidden_dim, B, H, W), (1, 0, 2, 3))
    c_next = jnp.transpose(c_next_t[:, :N].reshape(hidden_dim, B, H, W),
                           (1, 0, 2, 3))
    return h_next, c_next


def _reference_forward(x, h, c, weight_hwio, bias, kernel_size,
                       conv_dtype=jnp.float32):
    """Pure-JAX reference (lax conv).  conv_dtype lets us mirror the kernel's
    bf16 MXU operands (with f32 accumulation) for a tight comparison."""
    kh, kw = kernel_size
    combined = jnp.concatenate([x, h], axis=1).astype(conv_dtype)     # NCHW
    w_oihw = jnp.transpose(weight_hwio, (3, 2, 0, 1)).astype(conv_dtype)
    conv = lax.conv_general_dilated(
        combined, w_oihw,
        window_strides=(1, 1),
        padding=((kh // 2, kh // 2), (kw // 2, kw // 2)),
        dimension_numbers=("NCHW", "OIHW", "NCHW"),
        preferred_element_type=jnp.float32)
    conv = conv + bias.reshape(1, -1, 1, 1).astype(jnp.float32)
    hd = h.shape[1]
    cc_i, cc_f, cc_o, cc_g = jnp.split(conv, [hd, 2 * hd, 3 * hd], axis=1)
    i = jax.nn.sigmoid(cc_i)
    f = jax.nn.sigmoid(cc_f)
    o = jax.nn.sigmoid(cc_o)
    g = jnp.tanh(cc_g)
    c_next = f * c + i * g
    h_next = o * jnp.tanh(c_next)
    return h_next, c_next


if __name__ == "__main__":
    # Module config (small, consistent with ConvLSTMCell.__init__).
    input_dim = 4
    hidden_dim = 32
    kernel_size = (3, 3)
    B, H, W = 2, 16, 16
    Cin = input_dim + hidden_dim

    key = jax.random.PRNGKey(0)
    kx_, khh, kcc, kww, kbb = jax.random.split(key, 5)

    x = jax.random.normal(kx_, (B, input_dim, H, W), dtype=jnp.float32)
    h_cur = jax.random.normal(khh, (B, hidden_dim, H, W), dtype=jnp.float32)
    c_cur = jax.random.normal(kcc, (B, hidden_dim, H, W), dtype=jnp.float32)

    # Deterministic synthetic Conv2d parameters (HWIO layout).
    weight = 0.1 * jax.random.normal(
        kww, (kernel_size[0], kernel_size[1], Cin, 4 * hidden_dim),
        dtype=jnp.float32)
    bias = 0.1 * jax.random.normal(kbb, (4 * hidden_dim,), dtype=jnp.float32)

    h_next, c_next = conv_lstm_cell_forward(x, h_cur, c_cur, weight, bias,
                                            kernel_size=kernel_size)
    jax.block_until_ready((h_next, c_next))

    assert h_next.shape == (B, hidden_dim, H, W)
    assert c_next.shape == (B, hidden_dim, H, W)

    # Tight check vs a reference that mirrors the kernel's quantization choices
    # (bf16 conv operands, bf16-rounded bias since the kernel folds the bias
    # into the bf16 MXU contraction).  Isolates kernel/layout bugs.
    bias_bf = bias.astype(jnp.bfloat16).astype(jnp.float32)
    h_ref_bf, c_ref_bf = _reference_forward(x, h_cur, c_cur, weight, bias_bf,
                                            kernel_size,
                                            conv_dtype=jnp.bfloat16)
    assert jnp.allclose(h_next, h_ref_bf, rtol=2e-3, atol=2e-3)
    assert jnp.allclose(c_next, c_ref_bf, rtol=2e-3, atol=2e-3)

    # Loose sanity check vs the pure-f32 reference; bf16 operand rounding over
    # K=324 contributes up to ~1e-2 absolute error in the gate pre-activations.
    h_ref, c_ref = _reference_forward(x, h_cur, c_cur, weight, bias,
                                      kernel_size, conv_dtype=jnp.float32)
    assert jnp.allclose(h_next, h_ref, rtol=5e-2, atol=5e-2)
    assert jnp.allclose(c_next, c_ref, rtol=5e-2, atol=5e-2)

    print("KERNEL_OK")
</pallas_src>

<mosaic_0001>
module attributes {stable_mosaic.version = 11 : i64} {
  func.func @_convlstm_gates_kernel(%arg0: i32, %arg1: memref<128x384xbf16, #tpu.memory_space<vmem>>, %arg2: memref<384x512xbf16, #tpu.memory_space<vmem>>, %arg3: memref<32x512xf32, #tpu.memory_space<vmem>>, %arg4: memref<32x512xf32, #tpu.memory_space<vmem>>, %arg5: memref<32x512xf32, #tpu.memory_space<vmem>>) attributes {dimension_semantics = [#tpu.dimension_semantics<parallel>], iteration_bounds = array<i64: 1>, scalar_prefetch = 0 : i64, scratch_operands = 0 : i64, tpu.core_type = #tpu.core_type<tc>, window_params = [{pipeline_mode = #tpu.pipeline_mode<synchronous>, transform_indices = @transform_0, window_bounds = array<i64: 128, 384>}, {transform_indices = @transform_1, window_bounds = array<i64: 384, 512>}, {transform_indices = @transform_2, window_bounds = array<i64: 32, 512>}, {transform_indices = @transform_3, window_bounds = array<i64: 32, 512>}, {transform_indices = @transform_4, window_bounds = array<i64: 32, 512>}]} {
    %c0 = arith.constant 0 : index
    %c0_0 = arith.constant 0 : index
    %0 = vector.load %arg1[%c0, %c0_0] : memref<128x384xbf16, #tpu.memory_space<vmem>>, vector<128x384xbf16>
    %c0_1 = arith.constant 0 : index
    %c0_2 = arith.constant 0 : index
    %1 = vector.load %arg2[%c0_1, %c0_2] : memref<384x512xbf16, #tpu.memory_space<vmem>>, vector<384x512xbf16>
    %cst = arith.constant dense<0.000000e+00> : vector<128x512xf32>
    %2 = tpu.matmul %0, %1, %cst {dimension_numbers = #tpu.dot_dimension_numbers<[1], [0], [0], [1], [0, 0, 1, 1], [], []>} : vector<128x384xbf16>, vector<384x512xbf16>, vector<128x512xf32> -> vector<128x512xf32>
    %3 = vector.extract_strided_slice %2 {offsets = [0, 0], sizes = [32, 512], strides = [1, 1]} : vector<128x512xf32> to vector<32x512xf32>
    %4 = arith.negf %3 : vector<32x512xf32>
    %5 = math.exp %4 : vector<32x512xf32>
    %cst_3 = arith.constant 1.000000e+00 : f32
    %6 = vector.broadcast %cst_3 : f32 to vector<32x512xf32>
    %7 = arith.addf %6, %5 : vector<32x512xf32>
    %8 = arith.divf %6, %7 : vector<32x512xf32>
    %9 = vector.extract_strided_slice %2 {offsets = [32, 0], sizes = [32, 512], strides = [1, 1]} : vector<128x512xf32> to vector<32x512xf32>
    %10 = arith.negf %9 : vector<32x512xf32>
    %11 = math.exp %10 : vector<32x512xf32>
    %cst_4 = arith.constant 1.000000e+00 : f32
    %12 = vector.broadcast %cst_4 : f32 to vector<32x512xf32>
    %13 = arith.addf %12, %11 : vector<32x512xf32>
    %14 = arith.divf %12, %13 : vector<32x512xf32>
    %15 = vector.extract_strided_slice %2 {offsets = [64, 0], sizes = [32, 512], strides = [1, 1]} : vector<128x512xf32> to vector<32x512xf32>
    %16 = arith.negf %15 : vector<32x512xf32>
    %17 = math.exp %16 : vector<32x512xf32>
    %cst_5 = arith.constant 1.000000e+00 : f32
    %18 = vector.broadcast %cst_5 : f32 to vector<32x512xf32>
    %19 = arith.addf %18, %17 : vector<32x512xf32>
    %20 = arith.divf %18, %19 : vector<32x512xf32>
    %21 = vector.extract_strided_slice %2 {offsets = [96, 0], sizes = [32, 512], strides = [1, 1]} : vector<128x512xf32> to vector<32x512xf32>
    %22 = math.tanh %21 : vector<32x512xf32>
    %c0_6 = arith.constant 0 : index
    %c0_7 = arith.constant 0 : index
    %23 = vector.load %arg3[%c0_6, %c0_7] : memref<32x512xf32, #tpu.memory_space<vmem>>, vector<32x512xf32>
    %24 = arith.mulf %14, %23 : vector<32x512xf32>
    %25 = arith.mulf %8, %22 : vector<32x512xf32>
    %26 = arith.addf %24, %25 : vector<32x512xf32>
    %27 = math.tanh %26 : vector<32x512xf32>
    %28 = arith.mulf %20, %27 : vector<32x512xf32>
    %c0_8 = arith.constant 0 : index
    %c0_9 = arith.constant 0 : index
    %29 = vector.load %arg5[%c0_8, %c0_9] : memref<32x512xf32, #tpu.memory_space<vmem>>, vector<32x512xf32>
    tpu.vector_store %arg5[%c0_8, %c0_9], %26 {strides = array<i32>} : memref<32x512xf32, #tpu.memory_space<vmem>>, vector<32x512xf32>,
    %c0_10 = arith.constant 0 : index
    %c0_11 = arith.constant 0 : index
    %30 = vector.load %arg4[%c0_10, %c0_11] : memref<32x512xf32, #tpu.memory_space<vmem>>, vector<32x512xf32>
    tpu.vector_store %arg4[%c0_10, %c0_11], %28 {strides = array<i32>} : memref<32x512xf32, #tpu.memory_space<vmem>>, vector<32x512xf32>,
    return
  }
  func.func @transform_0(%arg0: i32) -> (i32, i32) {
    %c0_i32 = arith.constant 0 : i32
    %c0_i32_0 = arith.constant 0 : i32
    %c0_i32_1 = arith.constant 0 : i32
    return %c0_i32, %c0_i32_0 : i32, i32
  }
  func.func @transform_1(%arg0: i32) -> (i32, i32) {
    %c0_i32 = arith.constant 0 : i32
    %c0_i32_0 = arith.constant 0 : i32
    return %c0_i32, %arg0 : i32, i32
  }
  func.func @transform_2(%arg0: i32) -> (i32, i32) {
    %c0_i32 = arith.constant 0 : i32
    %c0_i32_0 = arith.constant 0 : i32
    return %c0_i32, %arg0 : i32, i32
  }
  func.func @transform_3(%arg0: i32) -> (i32, i32) {
    %c0_i32 = arith.constant 0 : i32
    %c0_i32_0 = arith.constant 0 : i32
    return %c0_i32, %arg0 : i32, i32
  }
  func.func @transform_4(%arg0: i32) -> (i32, i32) {
    %c0_i32 = arith.constant 0 : i32
    %c0_i32_0 = arith.constant 0 : i32
    return %c0_i32, %arg0 : i32, i32
  }
}

</mosaic_0001>

<bundles_post_ra>
// kernel: conv_lstm_cell_forward.1
= control target key start
LH: loop header
LB: loop body
LE: loop exit
PB: predicated region body
PF: predicated region fallthrough
CT: control target
= control target key end

     0   :  { %v2262_v1 = vmov 0   ;;  %s3155_s1 = inlined_call_operand.vmem [shape: bf16[384,512], index: 1, kind: input, shape index: {}]   ;;  %s3156_s0 = inlined_call_operand.vmem [shape: bf16[128,384], index: 0, kind: input, shape index: {}]   ;;  %s3157_s2 = inlined_call_operand.vmem [shape: f32[32,512], index: 2, kind: input, shape index: {}]   ;;  %s3158_s4 = inlined_call_operand.vmem [shape: f32[32,512], index: 4, kind: output, shape index: {1}]   ;;  %s3159_s3 = inlined_call_operand.vmem [shape: f32[32,512], index: 3, kind: output, shape index: {0}]  }
   0x1   :  { %v1830_v0 = vld [vmem:[%s3155_s1 + $0xe4] ss:$16 sps:$4 sm:$0xff]   ;;  %898 = vmatprep.mubr.bf16.mxu1 %v2262_v1  ;;  %v1834_v3 = vld [vmem:[%s3155_s1 + $0xe0] ss:$16 sps:$4 sm:$0xff]   ;;  %v1883_v34 = vld [vmem:[%s3155_s1 + $0xec] ss:$16 sps:$4 sm:$0xff]  }
   0x2   :  { %v1832_v2 = vld [vmem:[%s3155_s1 + $0x2e4] ss:$16 sps:$4 sm:$0xff]   ;;  %753 = vmatprep.subr.bf16.mxu0 %v1830_v0  ;;  %v1835_v4 = vld [vmem:[%s3155_s1 + $0x2e0] ss:$16 sps:$4 sm:$0xff]   ;;  %v1881_v36 = vld [vmem:[%s3155_s1 + $0xe8] ss:$16 sps:$4 sm:$0xff]  }
   0x3   :  { %866 = vmatprep.subr.bf16.mxu1 %v1832_v2  ;;  %v1836_v5 = vld [vmem:[%s3155_s1 + $0xc4] ss:$16 sps:$4 sm:$0xff]   ;;  %754 = vmatpush1.bf16.msra.mxu0 %v1834_v3  ;;  %v1840_v7 = vld [vmem:[%s3155_s1 + $0xc0] ss:$16 sps:$4 sm:$0xff]   ;;  %v1889_v39 = vld [vmem:[%s3155_s1 + $0xcc] ss:$16 sps:$4 sm:$0xff]  }
   0x4   :  { %867 = vmatpush1.bf16.msra.mxu1 %v1835_v4  ;;  %v1838_v6 = vld [vmem:[%s3155_s1 + $0x2c4] ss:$16 sps:$4 sm:$0xff]   ;;  %755 = vmatprep.subr.bf16.mxu0 %v1836_v5  ;;  %v1841_v8 = vld [vmem:[%s3155_s1 + $0x2c0] ss:$16 sps:$4 sm:$0xff]   ;;  %v1887_v40 = vld [vmem:[%s3155_s1 + $0xc8] ss:$16 sps:$4 sm:$0xff]  }
   0x5   :  { %868 = vmatprep.subr.bf16.mxu1 %v1838_v6  ;;  %v1842_v9 = vld [vmem:[%s3155_s1 + $0xa4] ss:$16 sps:$4 sm:$0xff]   ;;  %v1846_v11 = vld [vmem:[%s3155_s1 + $0xa0] ss:$16 sps:$4 sm:$0xff]   ;;  %v1896_v43 = vld [vmem:[%s3155_s1 + $0xac] ss:$16 sps:$4 sm:$0xff]  }
   0x6   :  { %v1844_v10 = vld [vmem:[%s3155_s1 + $0x2a4] ss:$16 sps:$4 sm:$0xff]   ;;  %v1847_v12 = vld [vmem:[%s3155_s1 + $0x2a0] ss:$16 sps:$4 sm:$0xff]   ;;  %v1894_v45 = vld [vmem:[%s3155_s1 + $0xa8] ss:$16 sps:$4 sm:$0xff]  }
   0x7   :  { %756 = vmatpush1.bf16.msra.mxu0 %v1840_v7  ;;  %v1848_v13 = vld [vmem:[%s3155_s1 + $0x84] ss:$16 sps:$4 sm:$0xff]   ;;  %v1852_v15 = vld [vmem:[%s3155_s1 + $0x80] ss:$16 sps:$4 sm:$0xff]   ;;  %v1902_v48 = vld [vmem:[%s3155_s1 + $0x8c] ss:$16 sps:$4 sm:$0xff]  }
   0x8   :  { %869 = vmatpush1.bf16.msra.mxu1 %v1841_v8  ;;  %757 = vmatprep.subr.bf16.mxu0 %v1842_v9  ;;  %v1850_v14 = vld [vmem:[%s3155_s1 + $0x284] ss:$16 sps:$4 sm:$0xff]   ;;  %v1853_v16 = vld [vmem:[%s3155_s1 + $0x280] ss:$16 sps:$4 sm:$0xff]   ;;  %v1900_v49 = vld [vmem:[%s3155_s1 + $0x88] ss:$16 sps:$4 sm:$0xff]  }
   0x9   :  { %870 = vmatprep.subr.bf16.mxu1 %v1844_v10  ;;  %v1854_v17 = vld [vmem:[%s3155_s1 + $0x64] ss:$16 sps:$4 sm:$0xff]   ;;  %v1858_v19 = vld [vmem:[%s3155_s1 + $0x60] ss:$16 sps:$4 sm:$0xff]   ;;  %v1909_v52 = vld [vmem:[%s3155_s1 + $0x6c] ss:$16 sps:$4 sm:$0xff]  }
   0xa   :  { %v1856_v18 = vld [vmem:[%s3155_s1 + $0x264] ss:$16 sps:$4 sm:$0xff]   ;;  %v1859_v20 = vld [vmem:[%s3155_s1 + $0x260] ss:$16 sps:$4 sm:$0xff]   ;;  %v1907_v54 = vld [vmem:[%s3155_s1 + $0x68] ss:$16 sps:$4 sm:$0xff]  }
   0xb   :  { %758 = vmatpush1.bf16.msra.mxu0 %v1846_v11  ;;  %v1860_v21 = vld [vmem:[%s3155_s1 + $0x44] ss:$16 sps:$4 sm:$0xff]   ;;  %v1864_v23 = vld [vmem:[%s3155_s1 + $0x40] ss:$16 sps:$4 sm:$0xff]   ;;  %v1915_v58 = vld [vmem:[%s3155_s1 + $0x4c] ss:$16 sps:$4 sm:$0xff]  }
   0xc   :  { %871 = vmatpush1.bf16.msra.mxu1 %v1847_v12  ;;  %759 = vmatprep.subr.bf16.mxu0 %v1848_v13  ;;  %v1862_v22 = vld [vmem:[%s3155_s1 + $0x244] ss:$16 sps:$4 sm:$0xff]   ;;  %v1865_v24 = vld [vmem:[%s3155_s1 + $0x240] ss:$16 sps:$4 sm:$0xff]   ;;  %v1913_v59 = vld [vmem:[%s3155_s1 + $0x48] ss:$16 sps:$4 sm:$0xff]  }
   0xd   :  { %872 = vmatprep.subr.bf16.mxu1 %v1850_v14  ;;  %v1866_v25 = vld [vmem:[%s3155_s1 + $0x24] ss:$16 sps:$4 sm:$0xff]   ;;  %v1870_v27 = vld [vmem:[%s3155_s1 + $0x20] ss:$16 sps:$4 sm:$0xff]   ;;  %v1922_v62 = vld [vmem:[%s3155_s1 + $0x2c] ss:$16 sps:$4 sm:$0xff]  }
   0xe   :  { %v1868_v26 = vld [vmem:[%s3155_s1 + $0x224] ss:$16 sps:$4 sm:$0xff]   ;;  %v1871_v28 = vld [vmem:[%s3155_s1 + $0x220] ss:$16 sps:$4 sm:$0xff]   ;;  %v1920_v0 = vld [vmem:[%s3155_s1 + $0x28] ss:$16 sps:$4 sm:$0xff]  }
   0xf   :  { %760 = vmatpush1.bf16.msra.mxu0 %v1852_v15  ;;  %v1872_v29 = vld [vmem:[%s3155_s1 + $0x4] ss:$16 sps:$4 sm:$0xff]   ;;  %v1876_v31 = vld [vmem:[%s3155_s1] ss:$16 sps:$4 sm:$0xff]   ;;  %v1928_v4 = vld [vmem:[%s3155_s1 + $0xc] ss:$16 sps:$4 sm:$0xff]  }
  0x10   :  { %873 = vmatpush1.bf16.msra.mxu1 %v1853_v16  ;;  %761 = vmatprep.subr.bf16.mxu0 %v1854_v17  ;;  %v1874_v30 = vld [vmem:[%s3155_s1 + $0x204] ss:$16 sps:$4 sm:$0xff]   ;;  %v1877_v32 = vld [vmem:[%s3155_s1 + $0x200] ss:$16 sps:$4 sm:$0xff]   ;;  %v1926_v5 = vld [vmem:[%s3155_s1 + $0x8] ss:$16 sps:$4 sm:$0xff]  }
  0x11   :  { %874 = vmatprep.subr.bf16.mxu1 %v1856_v18  ;;  %v1878_v33 = vld [vmem:[%s3155_s1 + $0x1e4] ss:$16 sps:$4 sm:$0xff]   ;;  %v1884_v37 = vld [vmem:[%s3155_s1 + $0x1e0] ss:$16 sps:$4 sm:$0xff]   ;;  %v1936_v7 = vld [vmem:[%s3155_s1 + $0x1ec] ss:$16 sps:$4 sm:$0xff]  }
  0x12   :  { %v2394_v35 = vld [vmem:[%s3156_s0 + $0x8] ss:$12 sps:$4 sm:$0xff]   ;;  %v1890_v41 = vld [vmem:[%s3155_s1 + $0x1c0] ss:$16 sps:$4 sm:$0xff]   ;;  %v2456_v53 = vld [vmem:[%s3156_s0 + $0x38] ss:$12 sps:$4 sm:$0xff]  }
  0x13   :  { %762 = vmatpush1.bf16.msra.mxu0 %v1858_v19  ;;  %v1885_v38 = vld [vmem:[%s3155_s1 + $0x1c4] ss:$16 sps:$4 sm:$0xff]   ;;  %v2425_v44 = vld [vmem:[%s3156_s0 + $0x20] ss:$12 sps:$4 sm:$0xff]   ;;  %v2493_v63 = vld [vmem:[%s3156_s0 + $0x50] ss:$12 sps:$4 sm:$0xff]  }
  0x14   :  { %875 = vmatpush1.bf16.msra.mxu1 %v1859_v20  ;;  %763 = vmatprep.subr.bf16.mxu0 %v1860_v21  ;;  %v1891_v42 = vld [vmem:[%s3155_s1 + $0x1a4] ss:$16 sps:$4 sm:$0xff]   ;;  %v1897_v46 = vld [vmem:[%s3155_s1 + $0x1a0] ss:$16 sps:$4 sm:$0xff]   ;;  %v2520_v8 = vld [vmem:[%s3155_s1 + $0x2ec] ss:$16 sps:$4 sm:$0xff]  }
  0x15   :  { %876 = vmatprep.subr.bf16.mxu1 %v1862_v22  ;;  %v1898_v47 = vld [vmem:[%s3155_s1 + $0x184] ss:$16 sps:$4 sm:$0xff]   ;;  %v1903_v50 = vld [vmem:[%s3155_s1 + $0x180] ss:$16 sps:$4 sm:$0xff]   ;;  %v1934_v11 = vld [vmem:[%s3155_s1 + $0x1e8] ss:$16 sps:$4 sm:$0xff]  }
  0x16   :  { %v1904_v51 = vld [vmem:[%s3155_s1 + $0x164] ss:$16 sps:$4 sm:$0xff]   ;;  %v1910_v55 = vld [vmem:[%s3155_s1 + $0x160] ss:$16 sps:$4 sm:$0xff]   ;;  %v2539_v12 = vld [vmem:[%s3155_s1 + $0x2e8] ss:$16 sps:$4 sm:$0xff]  }
  0x17   :  { %764 = vmatpush1.bf16.msra.mxu0 %v1864_v23  ;;  %v2467_v56 = vld [vmem:[%s3156_s0 + $0x4] ss:$12 sps:$4 sm:$0xff]   ;;  %v2525_v9 = vld [vmem:[%s3156_s0] ss:$12 sps:$4 sm:$0xff]   ;;  %v2531_v10 = vld [vmem:[%s3156_s0 + $0x68] ss:$12 sps:$4 sm:$0xff]  }
  0x18   :  { %877 = vmatpush1.bf16.msra.mxu1 %v1865_v24  ;;  %765 = vmatprep.subr.bf16.mxu0 %v1866_v25  ;;  %v1911_v57 = vld [vmem:[%s3155_s1 + $0x144] ss:$16 sps:$4 sm:$0xff]   ;;  %v1916_v60 = vld [vmem:[%s3155_s1 + $0x140] ss:$16 sps:$4 sm:$0xff]   ;;  %v1942_v13 = vld [vmem:[%s3155_s1 + $0x1cc] ss:$16 sps:$4 sm:$0xff]  }
  0x19   :  { %878 = vmatprep.subr.bf16.mxu1 %v1868_v26  ;;  %785 = vmatprep.mubr.bf16.mxu0 %v2467_v56  ;;  %v1917_v61 = vld [vmem:[%s3155_s1 + $0x124] ss:$16 sps:$4 sm:$0xff]   ;;  %v1923_v2 = vld [vmem:[%s3155_s1 + $0x120] ss:$16 sps:$4 sm:$0xff]   ;;  %v2548_v14 = vld [vmem:[%s3156_s0 + $0x1c] ss:$12 sps:$4 sm:$0xff]  }
  0x1a   :  { %v1924_v3 = vld [vmem:[%s3155_s1 + $0x104] ss:$16 sps:$4 sm:$0xff]   ;;  %v1929_v6 = vld [vmem:[%s3155_s1 + $0x100] ss:$16 sps:$4 sm:$0xff]   ;;  %v1940_v15 = vld [vmem:[%s3155_s1 + $0x1c8] ss:$16 sps:$4 sm:$0xff]  }
  0x1b   :  { %766 = vmatpush1.bf16.msra.mxu0 %v1870_v27  ;;  %v2556_v16 = vld [vmem:[%s3155_s1 + $0x2cc] ss:$16 sps:$4 sm:$0xff]   ;;  %v2567_v18 = vld [vmem:[%s3155_s1 + $0x2c8] ss:$16 sps:$4 sm:$0xff]   ;;  %v2594_v23 = vld [vmem:[%s3156_s0 + $0x34] ss:$12 sps:$4 sm:$0xff]  }
  0x1c   :  { %879 = vmatpush1.bf16.msra.mxu1 %v1871_v28  ;;  %767 = vmatprep.subr.bf16.mxu0 %v1872_v29  ;;  %v1949_v17 = vld [vmem:[%s3155_s1 + $0x1ac] ss:$16 sps:$4 sm:$0xff]   ;;  %v2579_v20 = vld [vmem:[%s3156_s0 + $0x18] ss:$12 sps:$4 sm:$0xff]  }
  0x1d   :  { %880 = vmatprep.subr.bf16.mxu1 %v1874_v30  ;;  %v2573_v19 = vld [vmem:[%s3155_s1 + $0x2ac] ss:$16 sps:$4 sm:$0xff]   ;;  %v1947_v22 = vld [vmem:[%s3155_s1 + $0x1a8] ss:$16 sps:$4 sm:$0xff]  }
  0x1e   :  { %v2585_v21 = vld [vmem:[%s3156_s0 + $0x80] ss:$12 sps:$4 sm:$0xff]   ;;  %v2603_v25 = vld [vmem:[%s3155_s1 + $0x2a8] ss:$16 sps:$4 sm:$0xff]   ;;  %v2623_v29 = vld [vmem:[%s3156_s0 + $0x30] ss:$12 sps:$4 sm:$0xff]  }
  0x1f   :  { %768 = vmatpush1.bf16.msra.mxu0 %v1876_v31  ;;  %v1955_v24 = vld [vmem:[%s3155_s1 + $0x18c] ss:$16 sps:$4 sm:$0xff]   ;;  %v1953_v27 = vld [vmem:[%s3155_s1 + $0x188] ss:$16 sps:$4 sm:$0xff]  }
  0x20   :  { %881 = vmatpush1.bf16.msra.mxu1 %v1877_v32  ;;  %769 = vmatprep.subr.bf16.mxu0 %v1878_v33  ;;  %v2610_v26 = vld [vmem:[%s3155_s1 + $0x28c] ss:$16 sps:$4 sm:$0xff]   ;;  %v2629_v30 = vld [vmem:[%s3155_s1 + $0x288] ss:$16 sps:$4 sm:$0xff]  }
  0x21   :  { %979 = vmatprep.subr.bf16.mxu1 %v1883_v34  ;;  %v1962_v28 = vld [vmem:[%s3155_s1 + $0x16c] ss:$16 sps:$4 sm:$0xff]   ;;  %v2634_v31 = vld [vmem:[%s3156_s0 + $0x98] ss:$12 sps:$4 sm:$0xff]  }
  0x22   :  { %v1960_v32 = vld [vmem:[%s3155_s1 + $0x168] ss:$16 sps:$4 sm:$0xff]   ;;  %v1968_v34 = vld [vmem:[%s3155_s1 + $0x14c] ss:$16 sps:$4 sm:$0xff]  }
  0x23   :  { %899 = vmatmul.mubr.bf16.vlgmr.msra.gmra.mxu1 %v2394_v35  ;;  %770 = vmatpush2.bf16.msra.mxu0 %v1884_v37  ;;  %v2643_v33 = vld [vmem:[%s3156_s0 + $0x4c] ss:$12 sps:$4 sm:$0xff]  }
  0x24   :  { %980 = vmatpush1.bf16.msra.mxu1 %v1881_v36  ;;  %771 = vmatprep.subr.bf16.mxu0 %v1885_v38  ;;  %v1987_v36 = vld [vmem:[%s3155_s1 + $0x26c] ss:$16 sps:$4 sm:$0xff]   ;;  %v1985_v37 = vld [vmem:[%s3155_s1 + $0x268] ss:$16 sps:$4 sm:$0xff]  }
  0x25   :  { %981 = vmatprep.subr.bf16.mxu1 %v1889_v39  ;;  %908 = vmatprep.mubr.bf16.mxu1 %v2262_v1  ;;  %v1966_v38 = vld [vmem:[%s3155_s1 + $0x148] ss:$16 sps:$4 sm:$0xff]   ;;  %v1993_v39 = vld [vmem:[%s3155_s1 + $0x24c] ss:$16 sps:$4 sm:$0xff]  }
  0x27   :  { %772 = vmatpush2.bf16.msra.mxu0 %v1890_v41  ;;  %v1971_v41 = vld [vmem:[%s3156_s0 + $0x48] ss:$12 sps:$4 sm:$0xff]  }
  0x28   :  { %982 = vmatpush1.bf16.msra.mxu1 %v1887_v40  ;;  %773 = vmatprep.subr.bf16.mxu0 %v1891_v42  ;;  %v1975_v40 = vld [vmem:[%s3155_s1 + $0x12c] ss:$16 sps:$4 sm:$0xff]  }
  0x29   :  { %983 = vmatprep.subr.bf16.mxu1 %v1896_v43  ;;  %v2674_v42 = vld [vmem:[%s3156_s0 + $0xb0] ss:$12 sps:$4 sm:$0xff]   ;;  %v1973_v43 = vld [vmem:[%s3155_s1 + $0x128] ss:$16 sps:$4 sm:$0xff]  }
  0x2b   :  { %909 = vmatmul.mubr.bf16.gmra.mxu1 %v2425_v44  ;;  %774 = vmatpush2.bf16.msra.mxu0 %v1897_v46  ;;  %v1981_v46 = vld [vmem:[%s3155_s1 + $0x10c] ss:$16 sps:$4 sm:$0xff]  }
  0x2c   :  { %984 = vmatpush1.bf16.msra.mxu1 %v1894_v45  ;;  %775 = vmatprep.subr.bf16.mxu0 %v1898_v47  ;;  %v1982_v45 = vld [vmem:[%s3156_s0 + $0x64] ss:$12 sps:$4 sm:$0xff]   ;;  %v1991_v47 = vld [vmem:[%s3155_s1 + $0x248] ss:$16 sps:$4 sm:$0xff]  }
  0x2d   :  { %985 = vmatprep.subr.bf16.mxu1 %v1902_v48  ;;  %918 = vmatprep.mubr.bf16.mxu1 %v2262_v1  ;;  %v1999_v48 = vld [vmem:[%s3155_s1 + $0x22c] ss:$16 sps:$4 sm:$0xff]  }
  0x2f   :  { %776 = vmatpush2.bf16.msra.mxu0 %v1903_v50  ;;  %v1997_v50 = vld [vmem:[%s3155_s1 + $0x228] ss:$16 sps:$4 sm:$0xff]  }
  0x30   :  { %986 = vmatpush1.bf16.msra.mxu1 %v1900_v49  ;;  %777 = vmatprep.subr.bf16.mxu0 %v1904_v51  ;;  %v1979_v49 = vld [vmem:[%s3155_s1 + $0x108] ss:$16 sps:$4 sm:$0xff]   ;;  %v1984_v51 = vld [vmem:[%s3156_s0 + $0x60] ss:$12 sps:$4 sm:$0xff]  }
  0x31   :  { %987 = vmatprep.subr.bf16.mxu1 %v1909_v52  ;;  %v1988_v52 = vld [vmem:[%s3156_s0 + $0x7c] ss:$12 sps:$4 sm:$0xff]  }
  0x33   :  { %919 = vmatmul.mubr.bf16.gmra.mxu1 %v2456_v53  ;;  %778 = vmatpush2.bf16.msra.mxu0 %v1910_v55  ;;  %v2003_v55 = vld [vmem:[%s3155_s1 + $0x208] ss:$16 sps:$4 sm:$0xff]  }
  0x34   :  { %988 = vmatpush1.bf16.msra.mxu1 %v1907_v54  ;;  %779 = vmatprep.subr.bf16.mxu0 %v1911_v57  ;;  %v2005_v54 = vld [vmem:[%s3155_s1 + $0x20c] ss:$16 sps:$4 sm:$0xff]   ;;  %v1994_v57 = vld [vmem:[%s3156_s0 + $0x94] ss:$12 sps:$4 sm:$0xff]  }
  0x35   :  { %989 = vmatprep.subr.bf16.mxu1 %v1915_v58  ;;  %928 = vmatprep.mubr.bf16.mxu1 %v2262_v1  ;;  %v1996_v58 = vld [vmem:[%s3156_s0 + $0x90] ss:$12 sps:$4 sm:$0xff]  }
  0x37   :  { %780 = vmatpush2.bf16.msra.mxu0 %v1916_v60  ;;  %v2002_v60 = vld [vmem:[%s3156_s0 + $0xa8] ss:$12 sps:$4 sm:$0xff]  }
  0x38   :  { %990 = vmatpush1.bf16.msra.mxu1 %v1913_v59  ;;  %781 = vmatprep.subr.bf16.mxu0 %v1917_v61  ;;  %v2000_v59 = vld [vmem:[%s3156_s0 + $0xac] ss:$12 sps:$4 sm:$0xff]  }
  0x39   :  { %991 = vmatprep.subr.bf16.mxu1 %v1922_v62 }
  0x3b   :  { %929 = vmatmul.mubr.bf16.gmra.mxu1 %v2493_v63  ;;  %782 = vmatpush2.bf16.msra.mxu0 %v1923_v2 }
  0x3c   :  { %992 = vmatpush1.bf16.msra.mxu1 %v1920_v0  ;;  %783 = vmatprep.subr.bf16.mxu0 %v1924_v3 }
  0x3d   :  { %993 = vmatprep.subr.bf16.mxu1 %v1928_v4  ;;  %938 = vmatprep.mubr.bf16.mxu1 %v2262_v1 }
  0x3f   :  { %784 = vmatpush2.bf16.msra.mxu0 %v1929_v6 }
  0x40   :  { %994 = vmatpush1.bf16.msra.mxu1 %v1926_v5  ;;  %1092 = vmatprep.subr.bf16.mxu0 %v2520_v8 }
  0x41   :  { %995 = vmatprep.subr.bf16.mxu1 %v1936_v7 }
  0x42   :  { %786 = vmatmul.mubr.bf16.vlgmr.msra.gmra.mxu0 %v2525_v9 }
  0x43   :  { %939 = vmatmul.mubr.bf16.gmra.mxu1 %v2531_v10  ;;  %1093 = vmatpush1.bf16.msra.mxu0 %v2539_v12 }
  0x44   :  { %996 = vmatpush2.bf16.msra.mxu1 %v1934_v11  ;;  %795 = vmatprep.mubr.bf16.mxu0 %v2548_v14 }
  0x45   :  { %997 = vmatprep.subr.bf16.mxu1 %v1942_v13  ;;  %948 = vmatprep.mubr.bf16.mxu1 %v2262_v1 }
  0x46   :  { %1094 = vmatprep.subr.bf16.mxu0 %v2556_v16 }
  0x47   :  { %1095 = vmatpush1.bf16.msra.mxu0 %v2567_v18 }
  0x48   :  { %998 = vmatpush2.bf16.msra.mxu1 %v1940_v15  ;;  %1096 = vmatprep.subr.bf16.mxu0 %v2573_v19 }
  0x49   :  { %999 = vmatprep.subr.bf16.mxu1 %v1949_v17 }
  0x4a   :  { %796 = vmatmul.mubr.bf16.gmra.mxu0 %v2579_v20 }
  0x4b   :  { %949 = vmatmul.mubr.bf16.gmra.mxu1 %v2585_v21  ;;  %805 = vmatprep.mubr.bf16.mxu0 %v2594_v23 }
  0x4c   :  { %1000 = vmatpush2.bf16.msra.mxu1 %v1947_v22  ;;  %958 = vmatprep.mubr.bf16.mxu1 %v2262_v1 }
  0x4d   :  { %1001 = vmatprep.subr.bf16.mxu1 %v1955_v24  ;;  %1097 = vmatpush1.bf16.msra.mxu0 %v2603_v25 }
  0x4e   :  { %1098 = vmatprep.subr.bf16.mxu0 %v2610_v26 }
  0x50   :  { %1002 = vmatpush2.bf16.msra.mxu1 %v1953_v27 }
  0x51   :  { %1003 = vmatprep.subr.bf16.mxu1 %v1962_v28  ;;  %1099 = vmatpush1.bf16.msra.mxu0 %v2629_v30 }
  0x52   :  { %806 = vmatmul.mubr.bf16.gmra.mxu0 %v2623_v29  ;;  %1100 = vmatprep.subr.bf16.mxu0 %v1987_v36 }
  0x53   :  { %959 = vmatmul.mubr.bf16.gmra.mxu1 %v2634_v31  ;;  %815 = vmatprep.mubr.bf16.mxu0 %v2643_v33 }
  0x54   :  { %1004 = vmatpush2.bf16.msra.mxu1 %v1960_v32  ;;  %968 = vmatprep.mubr.bf16.mxu1 %v2262_v1 }
  0x55   :  { %1005 = vmatprep.subr.bf16.mxu1 %v1968_v34  ;;  %1101 = vmatpush1.bf16.msra.mxu0 %v1985_v37 }
  0x56   :  { %1102 = vmatprep.subr.bf16.mxu0 %v1993_v39 }
  0x58   :  { %1006 = vmatpush2.bf16.msra.mxu1 %v1966_v38 }
  0x59   :  { %1007 = vmatprep.subr.bf16.mxu1 %v1975_v40  ;;  %1103 = vmatpush1.bf16.msra.mxu0 %v1991_v47 }
  0x5a   :  { %816 = vmatmul.mubr.bf16.gmra.mxu0 %v1971_v41  ;;  %1104 = vmatprep.subr.bf16.mxu0 %v1999_v48 }
  0x5b   :  { %969 = vmatmul.mubr.bf16.gmra.mxu1 %v2674_v42  ;;  %825 = vmatprep.mubr.bf16.mxu0 %v1982_v45 }
  0x5c   :  { %1008 = vmatpush2.bf16.msra.mxu1 %v1973_v43  ;;  %1011 = vmatprep.mubr.bf16.mxu1 %v2467_v56  ;;  %v1990_v56 = vld [vmem:[%s3156_s0 + $0x78] ss:$12 sps:$4 sm:$0xff]  }
  0x5d   :  { %1009 = vmatprep.subr.bf16.mxu1 %v1981_v46  ;;  %1105 = vmatpush1.bf16.msra.mxu0 %v1997_v50 }
  0x5e   :  { %1106 = vmatprep.subr.bf16.mxu0 %v2005_v54 }
  0x60   :  { %1010 = vmatpush2.bf16.msra.mxu1 %v1979_v49 }
  0x61   :  { %1813 = vmatprep.subr.bf16.mxu1 %v2520_v8  ;;  %1107 = vmatpush1.bf16.msra.mxu0 %v2003_v55 }
  0x62   :  { %826 = vmatmul.mubr.bf16.gmra.mxu0 %v1984_v51 }
  0x63   :  { %1012 = vmatmul.mubr.bf16.vlgmr.msra.gmra.mxu1 %v2525_v9  ;;  %835 = vmatprep.mubr.bf16.mxu0 %v1988_v52 }
  0x64   :  { %1821 = vmatpush1.bf16.msra.mxu1 %v2539_v12  ;;  %1021 = vmatprep.mubr.bf16.mxu1 %v2548_v14 }
  0x65   :  { %1814 = vmatprep.subr.bf16.mxu1 %v2556_v16 }
  0x68   :  { %1822 = vmatpush1.bf16.msra.mxu1 %v2567_v18 }
  0x69   :  { %1815 = vmatprep.subr.bf16.mxu1 %v2573_v19 }
  0x6a   :  { %836 = vmatmul.mubr.bf16.gmra.mxu0 %v1990_v56 }
  0x6b   :  { %1022 = vmatmul.mubr.bf16.gmra.mxu1 %v2579_v20  ;;  %845 = vmatprep.mubr.bf16.mxu0 %v1994_v57 }
  0x6c   :  { %1031 = vmatprep.mubr.bf16.mxu1 %v2594_v23  ;;  %1823 = vmatpush1.bf16.msra.mxu1 %v2603_v25 }
  0x6d   :  { %1816 = vmatprep.subr.bf16.mxu1 %v2610_v26 }
  0x70   :  { %1824 = vmatpush1.bf16.msra.mxu1 %v2629_v30 }
  0x71   :  { %1817 = vmatprep.subr.bf16.mxu1 %v1987_v36 }
  0x72   :  { %846 = vmatmul.mubr.bf16.gmra.mxu0 %v1996_v58 }
  0x73   :  { %1032 = vmatmul.mubr.bf16.gmra.mxu1 %v2623_v29  ;;  %855 = vmatprep.mubr.bf16.mxu0 %v2000_v59 }
  0x74   :  { %1041 = vmatprep.mubr.bf16.mxu1 %v2643_v33  ;;  %1825 = vmatpush1.bf16.msra.mxu1 %v1985_v37 }
  0x75   :  { %1818 = vmatprep.subr.bf16.mxu1 %v1993_v39 }
  0x78   :  { %1826 = vmatpush1.bf16.msra.mxu1 %v1991_v47 }
  0x79   :  { %1819 = vmatprep.subr.bf16.mxu1 %v1999_v48 }
  0x7a   :  { %856 = vmatmul.mubr.bf16.gmra.mxu0 %v2002_v60 }
  0x7b   :  { %1042 = vmatmul.mubr.bf16.gmra.mxu1 %v1971_v41  ;;  %1124 = vmatprep.mubr.bf16.mxu0 %v2262_v1 }
  0x7c   :  { %1051 = vmatprep.mubr.bf16.mxu1 %v1982_v45  ;;  %1827 = vmatpush1.bf16.msra.mxu1 %v1997_v50 }
  0x7d   :  { %1820 = vmatprep.subr.bf16.mxu1 %v2005_v54 }
  0x80   :  { %1828 = vmatpush1.bf16.msra.mxu1 %v2003_v55 }
  0x82   :  { %1125 = vmatmul.mubr.bf16.vlgmr.msra.gmra.mxu0 %v2394_v35 }
  0x83   :  { %1052 = vmatmul.mubr.bf16.gmra.mxu1 %v1984_v51  ;;  %1134 = vmatprep.mubr.bf16.mxu0 %v2262_v1 }
  0x84   :  { %1061 = vmatprep.mubr.bf16.mxu1 %v1988_v52 }
  0x8a   :  { %1135 = vmatmul.mubr.bf16.gmra.mxu0 %v2425_v44 }
  0x8b   :  { %1062 = vmatmul.mubr.bf16.gmra.mxu1 %v1990_v56  ;;  %1144 = vmatprep.mubr.bf16.mxu0 %v2262_v1 }
  0x8c   :  { %1071 = vmatprep.mubr.bf16.mxu1 %v1994_v57 }
  0x92   :  { %1145 = vmatmul.mubr.bf16.gmra.mxu0 %v2456_v53 }
  0x93   :  { %1072 = vmatmul.mubr.bf16.gmra.mxu1 %v1996_v58  ;;  %1154 = vmatprep.mubr.bf16.mxu0 %v2262_v1 }
  0x94   :  { %1081 = vmatprep.mubr.bf16.mxu1 %v2000_v59 }
  0x9a   :  { %1155 = vmatmul.mubr.bf16.gmra.mxu0 %v2493_v63 }
  0x9b   :  { %1082 = vmatmul.mubr.bf16.gmra.mxu1 %v2002_v60  ;;  %1164 = vmatprep.mubr.bf16.mxu0 %v2262_v1 }
  0x9c   :  { %1184 = vmatprep.mubr.bf16.mxu1 %v2262_v1 }
  0xa2   :  { %1165 = vmatmul.mubr.bf16.gmra.mxu0 %v2531_v10 }
  0xa3   :  { %1185 = vmatmul.mubr.bf16.vlgmr.msra.gmra.mxu1 %v2634_v31  ;;  %1174 = vmatprep.mubr.bf16.mxu0 %v2262_v1 }
  0xa4   :  { %1194 = vmatprep.mubr.bf16.mxu1 %v2262_v1 }
  0xaa   :  { %1175 = vmatmul.mubr.bf16.gmra.mxu0 %v2585_v21 }
  0xab   :  { %1195 = vmatmul.mubr.bf16.gmra.mxu1 %v2674_v42 }
  0xe3   :  { %v900_v35 = vpop.f32.mrf.mxu1 }
  0xe5   :  { %v902_v44 = vpop.f32.mrf.mxu1 }
  0xe7   :  { %v904_v53 = vpop.f32.mrf.mxu1 }
  0xe9   :  { %v906_v61 = vpop.f32.mrf.mxu1 }
  0xeb   :  { %v910_v62 = vpop.f32.mrf.mxu1 }
  0xed   :  { %v912_v63 = vpop.f32.mrf.mxu1 }
  0xef   :  { %v914_v0 = vpop.f32.mrf.mxu1 }
  0xf1   :  { %v916_v2 = vpop.f32.mrf.mxu1 }
  0xf3   :  { %v920_v3 = vpop.f32.mrf.mxu1 }
  0xf5   :  { %v922_v4 = vpop.f32.mrf.mxu1 }
  0xf7   :  { %v924_v5 = vpop.f32.mrf.mxu1 }
  0xf9   :  { %v2756_v6 = vpop.f32.mrf.mxu1 }
  0xfb   :  { %v2758_v7 = vpop.f32.mrf.mxu1 }
  0xfd   :  { %v2760_v1 = vpop.f32.mrf.mxu1 }
  0xff   :  { %v2762_v8 = vpop.f32.mrf.mxu1 }
 0x101   :  { %v2764_v9 = vpop.f32.mrf.mxu1 }
 0x102   :  { %v787_v10 = vpop.f32.mrf.mxu0 }
 0x103   :  { %v2766_v11 = vpop.f32.mrf.mxu1  ;;  %v901_v12 = vadd.f32 %v900_v35, %v787_v10 }
 0x104   :  { %v789_v13 = vpop.f32.mrf.mxu0 }
 0x105   :  { %v2768_v14 = vpop.f32.mrf.mxu1  ;;  %v1765_v15 = vmul.f32 -1.442695, %v901_v12  ;;  %v903_v16 = vadd.f32 %v902_v44, %v789_v13 }
 0x106   :  { %v791_v17 = vpop.f32.mrf.mxu0 }
 0x107   :  { %v2770_v18 = vpop.f32.mrf.mxu1  ;;  %2006 = vpow2.f32 %v1765_v15  ;;  %v1766_v19 = vmul.f32 -1.442695, %v903_v16  ;;  %v905_v20 = vadd.f32 %v904_v53, %v791_v17 }
 0x108   :  { %v793_v21 = vpop.f32.mrf.mxu0 }
 0x109   :  { %v2772_v22 = vpop.f32.mrf.mxu1  ;;  %2008 = vpow2.f32 %v1766_v19  ;;  %v1769_v23 = vmul.f32 -1.442695, %v905_v20  ;;  %v907_v24 = vadd.f32 %v906_v61, %v793_v21 }
 0x10a   :  { %v797_v25 = vpop.f32.mrf.mxu0 }
 0x10b   :  { %v2774_v26 = vpop.f32.mrf.mxu1  ;;  %2010 = vpow2.f32 %v1769_v23  ;;  %v1770_v27 = vmul.f32 -1.442695, %v907_v24  ;;  %v911_v28 = vadd.f32 %v910_v62, %v797_v25 }
 0x10c   :  { %v799_v29 = vpop.f32.mrf.mxu0 }
 0x10d   :  { %v2776_v30 = vpop.f32.mrf.mxu1  ;;  %2012 = vpow2.f32 %v1770_v27  ;;  %v1773_v31 = vmul.f32 -1.442695, %v911_v28  ;;  %v913_v32 = vadd.f32 %v912_v63, %v799_v29 }
 0x10e   :  { %v801_v33 = vpop.f32.mrf.mxu0 }
 0x10f   :  { %v2778_v34 = vpop.f32.mrf.mxu1  ;;  %2014 = vpow2.f32 %v1773_v31  ;;  %v1774_v36 = vmul.f32 -1.442695, %v913_v32  ;;  %v915_v37 = vadd.f32 %v914_v0, %v801_v33 }
 0x110   :  { %v803_v38 = vpop.f32.mrf.mxu0 }
 0x111   :  { %v2780_v39 = vpop.f32.mrf.mxu1  ;;  %2016 = vpow2.f32 %v1774_v36  ;;  %v1777_v40 = vmul.f32 -1.442695, %v915_v37  ;;  %v917_v41 = vadd.f32 %v916_v2, %v803_v38 }
 0x112   :  { %v807_v42 = vpop.f32.mrf.mxu0 }
 0x113   :  { %v2782_v43 = vpop.f32.mrf.mxu1  ;;  %2018 = vpow2.f32 %v1777_v40  ;;  %v1778_v45 = vmul.f32 -1.442695, %v917_v41  ;;  %v921_v46 = vadd.f32 %v920_v3, %v807_v42 }
 0x114   :  { %v2007_v47 = vpop.eup %2006  ;;  %v809_v48 = vpop.f32.mrf.mxu0 }
 0x115   :  { %v2784_v49 = vpop.f32.mrf.mxu1  ;;  %v1253_v50 = vadd.f32 1.0, %v2007_v47  ;;  %2020 = vpow2.f32 %v1778_v45  ;;  %v1781_v51 = vmul.f32 -1.442695, %v921_v46  ;;  %v923_v52 = vadd.f32 %v922_v4, %v809_v48 }
 0x116   :  { %v2009_v54 = vpop.eup %2008  ;;  %v811_v55 = vpop.f32.mrf.mxu0 }
 0x117   :  { %v2786_v56 = vpop.f32.mrf.mxu1  ;;  %v1254_v57 = vadd.f32 1.0, %v2009_v54  ;;  %v1782_v58 = vmul.f32 -1.442695, %v923_v52  ;;  %v925_v59 = vadd.f32 %v924_v5, %v811_v55  ;;  %2022 = vpow2.f32 %v1781_v51 }
 0x118   :  { %v2011_v60 = vpop.eup %2010  ;;  %v813_v35 = vpop.f32.mrf.mxu0  ;;  %2024 = vrcp.f32 %v1253_v50 }
 0x119   :  { %v2788_v44 = vpop.f32.mrf.mxu1  ;;  %v1257_v53 = vadd.f32 1.0, %v2011_v60  ;;  %v1785_v61 = vmul.f32 -1.442695, %v925_v59  ;;  %v927_v62 = vadd.f32 %v2756_v6, %v813_v35  ;;  %2026 = vpow2.f32 %v1782_v58 }
 0x11a   :  { %v2013_v63 = vpop.eup %2012  ;;  %v817_v0 = vpop.f32.mrf.mxu0  ;;  %2028 = vrcp.f32 %v1254_v57 }
 0x11b   :  { %v2791_v2 = vpop.f32.mrf.mxu1  ;;  %v1258_v3 = vadd.f32 1.0, %v2013_v63  ;;  %v1786_v4 = vmul.f32 -1.442695, %v927_v62  ;;  %v931_v5 = vadd.f32 %v2758_v7, %v817_v0  ;;  %2030 = vpow2.f32 %v1785_v61 }
 0x11c   :  { %v2015_v10 = vpop.eup %2014  ;;  %v819_v12 = vpop.f32.mrf.mxu0  ;;  %2032 = vrcp.f32 %v1257_v53 }
 0x11d   :  { %v2794_v13 = vpop.f32.mrf.mxu1  ;;  %v1261_v15 = vadd.f32 1.0, %v2015_v10  ;;  %v1789_v16 = vmul.f32 -1.442695, %v931_v5  ;;  %v933_v6 = vadd.f32 %v2760_v1, %v819_v12  ;;  %2034 = vpow2.f32 %v1786_v4 }
 0x11e   :  { %v2017_v17 = vpop.eup %2016  ;;  %v821_v19 = vpop.f32.mrf.mxu0  ;;  %2036 = vrcp.f32 %v1258_v3 }
 0x11f   :  { %v2797_v20 = vpop.f32.mrf.mxu1  ;;  %v1262_v21 = vadd.f32 1.0, %v2017_v17  ;;  %v1790_v23 = vmul.f32 -1.442695, %v933_v6  ;;  %v935_v7 = vadd.f32 %v2762_v8, %v821_v19  ;;  %2038 = vpow2.f32 %v1789_v16 }
 0x120   :  { %v2019_v24 = vpop.eup %2018  ;;  %v823_v25 = vpop.f32.mrf.mxu0  ;;  %2040 = vrcp.f32 %v1261_v15 }
 0x121   :  { %v2800_v27 = vpop.f32.mrf.mxu1  ;;  %v1265_v28 = vadd.f32 1.0, %v2019_v24  ;;  %v1793_v29 = vmul.f32 -1.442695, %v935_v7  ;;  %v937_v1 = vadd.f32 %v2764_v9, %v823_v25  ;;  %2042 = vpow2.f32 %v1790_v23 }
 0x122   :  { %v2021_v31 = vpop.eup %2020  ;;  %v827_v32 = vpop.f32.mrf.mxu0  ;;  %2044 = vrcp.f32 %v1262_v21 }
 0x123   :  { %v2803_v33 = vpop.f32.mrf.mxu1  ;;  %v1794_v36 = vmul.f32 -1.442695, %v937_v1  ;;  %v941_v37 = vadd.f32 %v2766_v11, %v827_v32  ;;  %v1266_v8 = vadd.f32 1.0, %v2021_v31  ;;  %2046 = vpow2.f32 %v1793_v29 }
 0x124   :  { %v829_v38 = vpop.f32.mrf.mxu0  ;;  %v2023_v41 = vpop.eup %2022  ;;  %2048 = vrcp.f32 %v1265_v28 }
 0x125   :  { %v2806_v40 = vpop.f32.mrf.mxu1  ;;  %v1797_v42 = vmul.f32 -1.442695, %v941_v37  ;;  %v943_v45 = vadd.f32 %v2768_v14, %v829_v38  ;;  %v2809_v9 = vpop.eup %2024  ;;  %v1349_v46 = vadd.f32 1.0, %v2023_v41  ;;  %2050 = vpow2.f32 %v1794_v36 }
 0x126   :  { %v831_v47 = vpop.f32.mrf.mxu0  ;;  %v2027_v50 = vpop.eup %2026 }
 0x127   :  { %v2811_v48 = vpop.f32.mrf.mxu1  ;;  %2052 = vpow2.f32 %v1797_v42  ;;  %v1798_v11 = vmul.f32 -1.442695, %v943_v45  ;;  %v945_v51 = vadd.f32 %v2770_v18, %v831_v47  ;;  %v2814_v52 = vpop.eup %2028  ;;  %v1350_v54 = vadd.f32 1.0, %v2027_v50 }
 0x128   :  { %2054 = vrcp.f32 %v1266_v8  ;;  %v833_v55 = vpop.f32.mrf.mxu0  ;;  %v2031_v14 = vpop.eup %2030 }
 0x129   :  { %v2816_v57 = vpop.f32.mrf.mxu1  ;;  %2056 = vpow2.f32 %v1798_v11  ;;  %v1801_v58 = vmul.f32 -1.442695, %v945_v51  ;;  %v947_v59 = vadd.f32 %v2772_v22, %v833_v55  ;;  %v2819_v60 = vpop.eup %2032  ;;  %v1353_v35 = vadd.f32 1.0, %v2031_v14 }
 0x12a   :  { %2058 = vrcp.f32 %v1349_v46  ;;  %v837_v53 = vpop.f32.mrf.mxu0  ;;  %v2035_v18 = vpop.eup %2034 }
 0x12b   :  { %v2821_v61 = vpop.f32.mrf.mxu1  ;;  %2060 = vpow2.f32 %v1801_v58  ;;  %v1802_v62 = vmul.f32 -1.442695, %v947_v59  ;;  %v951_v63 = vadd.f32 %v2774_v26, %v837_v53  ;;  %v2824_v0 = vpop.eup %2036  ;;  %v1354_v3 = vadd.f32 1.0, %v2035_v18 }
 0x12c   :  { %2062 = vrcp.f32 %v1350_v54  ;;  %v839_v4 = vpop.f32.mrf.mxu0  ;;  %v2039_v22 = vpop.eup %2038 }
 0x12d   :  { %v2826_v5 = vpop.f32.mrf.mxu1  ;;  %2064 = vpow2.f32 %v1802_v62  ;;  %v1805_v10 = vmul.f32 -1.442695, %v951_v63  ;;  %v953_v12 = vadd.f32 %v2776_v30, %v839_v4  ;;  %v2829_v15 = vpop.eup %2040  ;;  %v1357_v16 = vadd.f32 1.0, %v2039_v22 }
 0x12e   :  { %2066 = vrcp.f32 %v1353_v35  ;;  %v841_v6 = vpop.f32.mrf.mxu0  ;;  %v2043_v26 = vpop.eup %2042 }
 0x12f   :  { %v2831_v17 = vpop.f32.mrf.mxu1  ;;  %2068 = vpow2.f32 %v1805_v10  ;;  %v1806_v19 = vmul.f32 -1.442695, %v953_v12  ;;  %v955_v21 = vadd.f32 %v2778_v34, %v841_v6  ;;  %v2834_v23 = vpop.eup %2044  ;;  %v1358_v7 = vadd.f32 1.0, %v2043_v26 }
 0x130   :  { %2070 = vrcp.f32 %v1354_v3  ;;  %v843_v24 = vpop.f32.mrf.mxu0  ;;  %v2047_v30 = vpop.eup %2046 }
 0x131   :  { %v2836_v25 = vpop.f32.mrf.mxu1  ;;  %2072 = vpow2.f32 %v1806_v19  ;;  %v1809_v28 = vmul.f32 -1.442695, %v955_v21  ;;  %v957_v29 = vadd.f32 %v2780_v39, %v843_v24  ;;  %v2839_v1 = vpop.eup %2048  ;;  %v1361_v31 = vadd.f32 1.0, %v2047_v30 }
 0x132   :  { %2074 = vrcp.f32 %v1357_v16  ;;  %v847_v32 = vpop.f32.mrf.mxu0  ;;  %v2051_v34 = vpop.eup %2050 }
 0x133   :  { %v2841_v36 = vpop.f32.mrf.mxu1  ;;  %2076 = vpow2.f32 %v1809_v28  ;;  %v1810_v37 = vmul.f32 -1.442695, %v957_v29  ;;  %v1362_v38 = vadd.f32 1.0, %v2051_v34  ;;  %v961_v41 = vadd.f32 %v2782_v43, %v847_v32 }
 0x134   :  { %v2053_v8 = vpop.eup %2052  ;;  %2078 = vrcp.f32 %v1358_v7  ;;  %v849_v42 = vpop.f32.mrf.mxu0 }
 0x135   :  { %v2844_v45 = vpop.f32.mrf.mxu1  ;;  %v2846_v46 = vpop.eup %2054  ;;  %v1445_v39 = vadd.f32 1.0, %v2053_v8  ;;  %2080 = vpow2.f32 %v1810_v37  ;;  %v963_v50 = vadd.f32 %v2784_v49, %v849_v42 }
 0x136   :  { %v2057_v47 = vpop.eup %2056  ;;  %2082 = vrcp.f32 %v1361_v31  ;;  %v851_v11 = vpop.f32.mrf.mxu0 }
 0x137   :  { %v2849_v51 = vpop.f32.mrf.mxu1  ;;  %v2851_v54 = vpop.eup %2058  ;;  %2084 = vrcp.f32 %v1362_v38  ;;  %v1446_v55 = vadd.f32 1.0, %v2057_v47  ;;  %v965_v43 = vadd.f32 %v2786_v56, %v851_v11  ;;  %v1510_v11 = vld [vmem:[%s3157_s2 + $0x8] sm:$0xff] }
 0x138   :  { %v2061_v14 = vpop.eup %2060  ;;  %2086 = vtanh.f32 %v961_v41  ;;  %v853_v58 = vpop.f32.mrf.mxu0 }
 0x139   :  { %v2854_v59 = vpop.f32.mrf.mxu1  ;;  %v2856_v35 = vpop.eup %2062  ;;  %2088 = vrcp.f32 %v1445_v39  ;;  %v1449_v53 = vadd.f32 1.0, %v2061_v14  ;;  %v967_v49 = vadd.f32 %v2788_v44, %v853_v58 }
 0x13a   :  { %v2065_v18 = vpop.eup %2064  ;;  %2090 = vtanh.f32 %v963_v50  ;;  %v857_v62 = vpop.f32.mrf.mxu0 }
 0x13b   :  { %v2859_v63 = vpop.f32.mrf.mxu1  ;;  %v2861_v3 = vpop.eup %2066  ;;  %2092 = vrcp.f32 %v1446_v55  ;;  %v1450_v4 = vadd.f32 1.0, %v2065_v18  ;;  %v971_v56 = vadd.f32 %v2791_v2, %v857_v62  ;;  %v1513_v62 = vld [vmem:[%s3157_s2 + $0x20] sm:$0xff] }
 0x13c   :  { %v2069_v22 = vpop.eup %2068  ;;  %2094 = vtanh.f32 %v965_v43  ;;  %v859_v10 = vpop.f32.mrf.mxu0 }
 0x13d   :  { %v2864_v12 = vpop.f32.mrf.mxu1  ;;  %v2866_v16 = vpop.eup %2070  ;;  %2096 = vrcp.f32 %v1449_v53  ;;  %v1453_v6 = vadd.f32 1.0, %v2069_v22  ;;  %v973_v44 = vadd.f32 %v2794_v13, %v859_v10 }
 0x13e   :  { %v2073_v26 = vpop.eup %2072  ;;  %2098 = vtanh.f32 %v967_v49  ;;  %v861_v19 = vpop.f32.mrf.mxu0 }
 0x13f   :  { %v2869_v21 = vpop.f32.mrf.mxu1  ;;  %v2871_v7 = vpop.eup %2074  ;;  %2100 = vrcp.f32 %v1450_v4  ;;  %v1454_v24 = vadd.f32 1.0, %v2073_v26  ;;  %v975_v2 = vadd.f32 %v2797_v20, %v861_v19  ;;  %v1509_v20 = vld [vmem:[%s3157_s2] sm:$0xff] }
 0x140   :  { %v2077_v30 = vpop.eup %2076  ;;  %2102 = vtanh.f32 %v971_v56  ;;  %v863_v28 = vpop.f32.mrf.mxu0 }
 0x141   :  { %v2874_v29 = vpop.f32.mrf.mxu1  ;;  %v2876_v31 = vpop.eup %2078  ;;  %2104 = vrcp.f32 %v1453_v6  ;;  %v1457_v32 = vadd.f32 1.0, %v2077_v30  ;;  %v977_v13 = vadd.f32 %v2800_v27, %v863_v28 }
 0x142   :  { %v2081_v34 = vpop.eup %2080  ;;  %2106 = vtanh.f32 %v973_v44  ;;  %v1126_v8 = vpop.f32.mrf.mxu0  ;;  %v1514_v44 = vld [vmem:[%s3157_s2 + $0x28] sm:$0xff] }
 0x143   :  { %v2879_v37 = vpop.f32.mrf.mxu1  ;;  %v2881_v38 = vpop.eup %2082  ;;  %2108 = vrcp.f32 %v1454_v24  ;;  %v1127_v41 = vadd.f32 %v1126_v8, %v2803_v33  ;;  %v1458_v39 = vadd.f32 1.0, %v2081_v34  ;;  %v1525_v33 = vmul.f32 %v2851_v54, %v1509_v20 }
 0x144   :  { %v2887_v42 = vpop.eup %2084  ;;  %2110 = vtanh.f32 %v975_v2  ;;  %v1128_v50 = vpop.f32.mrf.mxu0  ;;  %v1526_v54 = vmul.f32 %v2856_v35, %v1510_v11  ;;  %v1529_v35 = vmul.f32 %v2861_v3, %v1513_v62  ;;  %v1530_v3 = vmul.f32 %v2866_v16, %v1514_v44 }
 0x145   :  { %v2889_v47 = vpop.f32.mrf.mxu1  ;;  %v2087_v27 = vpop.eup %2086  ;;  %2112 = vrcp.f32 %v1457_v32  ;;  %v1767_v55 = vmul.f32 -1.442695, %v1127_v41  ;;  %v1129_v14 = vadd.f32 %v1128_v50, %v2806_v40 }
 0x146   :  { %v2895_v43 = vpop.eup %2088  ;;  %v1541_v58 = vmul.f32 %v2087_v27, %v2809_v9  ;;  %2114 = vtanh.f32 %v977_v13  ;;  %v1130_v18 = vpop.f32.mrf.mxu0 }
 0x147   :  { %v2899_v53 = vpop.f32.mrf.mxu1  ;;  %v2091_v49 = vpop.eup %2090  ;;  %2116 = vpow2.f32 %v1767_v55  ;;  %v1768_v4 = vmul.f32 -1.442695, %v1129_v14  ;;  %v1131_v22 = vadd.f32 %v1130_v18, %v2811_v48 }
 0x148   :  { %v2905_v40 = vpop.eup %2092  ;;  %2118 = vrcp.f32 %v1458_v39  ;;  %v1557_v56 = vadd.f32 %v1541_v58, %v1525_v33  ;;  %v1542_v9 = vmul.f32 %v2091_v49, %v2814_v52  ;;  %v1132_v6 = vpop.f32.mrf.mxu0 }
 0x149   :  { %v2909_v10 = vpop.f32.mrf.mxu1  ;;  %v2095_v26 = vpop.eup %2094  ;;  %2120 = vpow2.f32 %v1768_v4  ;;  %v1771_v19 = vmul.f32 -1.442695, %v1131_v22  ;;  %v1133_v48 = vadd.f32 %v1132_v6, %v2816_v57  ;;  %v1517_v57 = vld [vmem:[%s3157_s2 + $0x40] sm:$0xff] }
 0x14a   :  { %v2915_v24 = vpop.eup %2096  ;;  %2122 = vtanh.f32 %v1557_v56  ;;  %1605 = vst [vmem:[%s3158_s4] sm:$0xff] %v1557_v56  ;;  %v1558_v52 = vadd.f32 %v1542_v9, %v1526_v54  ;;  %v1545_v30 = vmul.f32 %v2095_v26, %v2819_v60  ;;  %v1136_v28 = vpop.f32.mrf.mxu0  ;;  %v1533_v16 = vmul.f32 %v2871_v7, %v1517_v57 }
 0x14b   :  { %v2922_v2 = vpop.f32.mrf.mxu1  ;;  %v2099_v32 = vpop.eup %2098  ;;  %2124 = vpow2.f32 %v1771_v19  ;;  %v1772_v34 = vmul.f32 -1.442695, %v1133_v48  ;;  %v1137_v13 = vadd.f32 %v1136_v28, %v2821_v61  ;;  %v1518_v61 = vld [vmem:[%s3157_s2 + $0x48] sm:$0xff] }
 0x14c   :  { %v2928_v8 = vpop.eup %2100  ;;  %2126 = vtanh.f32 %v1558_v52  ;;  %1606 = vst [vmem:[%s3158_s4 + $0x8] sm:$0xff] %v1558_v52  ;;  %v1561_v60 = vadd.f32 %v1545_v30, %v1529_v35  ;;  %v1546_v20 = vmul.f32 %v2099_v32, %v2824_v0  ;;  %v1138_v39 = vpop.f32.mrf.mxu0  ;;  %v1534_v7 = vmul.f32 %v2876_v31, %v1518_v61 }
 0x14d   :  { %v2935_v41 = vpop.f32.mrf.mxu1  ;;  %v2103_v50 = vpop.eup %2102  ;;  %2128 = vpow2.f32 %v1772_v34  ;;  %v1775_v27 = vmul.f32 -1.442695, %v1137_v13  ;;  %v1139_v11 = vadd.f32 %v1138_v39, %v2826_v5  ;;  %v1521_v5 = vld [vmem:[%s3157_s2 + $0x60] sm:$0xff] }
 0x14e   :  { %v2941_v55 = vpop.eup %2104  ;;  %2130 = vtanh.f32 %v1561_v60  ;;  %1609 = vst [vmem:[%s3158_s4 + $0x20] sm:$0xff] %v1561_v60  ;;  %v1562_v0 = vadd.f32 %v1546_v20, %v1530_v3  ;;  %v1549_v14 = vmul.f32 %v2103_v50, %v2829_v15  ;;  %v1140_v58 = vpop.f32.mrf.mxu0  ;;  %v1537_v31 = vmul.f32 %v2881_v38, %v1521_v5 }
 0x14f   :  { %v2948_v33 = vpop.f32.mrf.mxu1  ;;  %v2107_v18 = vpop.eup %2106  ;;  %2132 = vpow2.f32 %v1775_v27  ;;  %v1776_v49 = vmul.f32 -1.442695, %v1139_v11  ;;  %v1141_v62 = vadd.f32 %v1140_v58, %v2831_v17  ;;  %v1522_v17 = vld [vmem:[%s3157_s2 + $0x68] sm:$0xff] }
 0x150   :  { %v2954_v4 = vpop.eup %2108  ;;  %2134 = vtanh.f32 %v1562_v0  ;;  %1610 = vst [vmem:[%s3158_s4 + $0x28] sm:$0xff] %v1562_v0  ;;  %v1565_v15 = vadd.f32 %v1549_v14, %v1533_v16  ;;  %v1550_v22 = vmul.f32 %v2107_v18, %v2834_v23  ;;  %v1142_v54 = vpop.f32.mrf.mxu0  ;;  %v1538_v57 = vmul.f32 %v2887_v42, %v1522_v17 }
 0x151   :  { %v2961_v56 = vpop.f32.mrf.mxu1  ;;  %v2111_v9 = vpop.eup %2110  ;;  %2136 = vpow2.f32 %v1776_v49  ;;  %v1779_v6 = vmul.f32 -1.442695, %v1141_v62  ;;  %v1143_v26 = vadd.f32 %v1142_v54, %v2836_v25 }
 0x152   :  { %v2967_v44 = vpop.eup %2112  ;;  %2138 = vtanh.f32 %v1565_v15  ;;  %1613 = vst [vmem:[%s3158_s4 + $0x40] sm:$0xff] %v1565_v15  ;;  %v1566_v23 = vadd.f32 %v1550_v22, %v1534_v7  ;;  %v1553_v19 = vmul.f32 %v2111_v9, %v2839_v1  ;;  %v1146_v52 = vpop.f32.mrf.mxu0 }
 0x153   :  { %v2974_v48 = vpop.f32.mrf.mxu1  ;;  %v2115_v35 = vpop.eup %2114  ;;  %2140 = vpow2.f32 %v1779_v6  ;;  %v1780_v30 = vmul.f32 -1.442695, %v1143_v26  ;;  %v1147_v25 = vadd.f32 %v1146_v52, %v2841_v36 }
 0x154   :  { %v2117_v28 = vpop.eup %2116  ;;  %2142 = vtanh.f32 %v1566_v23  ;;  %1614 = vst [vmem:[%s3158_s4 + $0x48] sm:$0xff] %v1566_v23  ;;  %v1569_v32 = vadd.f32 %v1553_v19, %v1537_v31  ;;  %v1554_v38 = vmul.f32 %v2115_v35, %v2846_v46  ;;  %v1148_v34 = vpop.f32.mrf.mxu0 }
 0x155   :  { %v2982_v1 = vpop.f32.mrf.mxu1  ;;  %v2984_v13 = vpop.eup %2118  ;;  %v1255_v60 = vadd.f32 1.0, %v2117_v28  ;;  %2144 = vpow2.f32 %v1780_v30  ;;  %v1149_v36 = vadd.f32 %v1148_v34, %v2844_v45  ;;  %v1783_v39 = vmul.f32 -1.442695, %v1147_v25 }
 0x156   :  { %v2121_v3 = vpop.eup %2120  ;;  %2146 = vtanh.f32 %v1569_v32  ;;  %1617 = vst [vmem:[%s3158_s4 + $0x60] sm:$0xff] %v1569_v32  ;;  %v1570_v20 = vadd.f32 %v1554_v38, %v1538_v57  ;;  %v1150_v46 = vpop.f32.mrf.mxu0 }
 0x157   :  { %v2990_v42 = vpop.f32.mrf.mxu1  ;;  %v2123_v50 = vpop.eup %2122  ;;  %2148 = vrcp.f32 %v1255_v60  ;;  %v1256_v61 = vadd.f32 1.0, %v2121_v3  ;;  %v1151_v27 = vadd.f32 %v1150_v46, %v2849_v51  ;;  %v1784_v45 = vmul.f32 -1.442695, %v1149_v36 }
 0x158   :  { %v2125_v11 = vpop.eup %2124  ;;  %v1589_v0 = vmul.f32 %v2123_v50, %v2895_v43  ;;  %2150 = vtanh.f32 %v1570_v20  ;;  %1618 = vst [vmem:[%s3158_s4 + $0x68] sm:$0xff] %v1570_v20  ;;  %v1152_v14 = vpop.f32.mrf.mxu0 }
 0x159   :  { %v2997_v16 = vpop.f32.mrf.mxu1  ;;  %v2127_v58 = vpop.eup %2126  ;;  %2152 = vrcp.f32 %v1256_v61  ;;  %v1259_v18 = vadd.f32 1.0, %v2125_v11  ;;  %v1153_v5 = vadd.f32 %v1152_v14, %v2854_v59  ;;  %v1787_v43 = vmul.f32 -1.442695, %v1151_v27 }
 0x15a   :  { %v2129_v49 = vpop.eup %2128  ;;  %1621 = vst [vmem:[%s3159_s3] sm:$0xff] %v1589_v0  ;;  %v1590_v51 = vmul.f32 %v2127_v58, %v2905_v40  ;;  %2154 = vpow2.f32 %v1783_v39  ;;  %v1156_v15 = vpop.f32.mrf.mxu0 }
 0x15b   :  { %v3004_v62 = vpop.f32.mrf.mxu1  ;;  %v2131_v7 = vpop.eup %2130  ;;  %2156 = vrcp.f32 %v1259_v18  ;;  %v1260_v22 = vadd.f32 1.0, %v2129_v49  ;;  %v1157_v54 = vadd.f32 %v1156_v15, %v2859_v63  ;;  %v1788_v17 = vmul.f32 -1.442695, %v1153_v5 }
 0x15c   :  { %v2133_v9 = vpop.eup %2132  ;;  %1622 = vst [vmem:[%s3159_s3 + $0x8] sm:$0xff] %v1590_v51  ;;  %v1593_v59 = vmul.f32 %v2131_v7, %v2915_v24  ;;  %2158 = vpow2.f32 %v1784_v45  ;;  %v1158_v6 = vpop.f32.mrf.mxu0 }
 0x15d   :  { %v3011_v40 = vpop.f32.mrf.mxu1  ;;  %v2135_v26 = vpop.eup %2134  ;;  %2160 = vrcp.f32 %v1260_v22  ;;  %v1263_v23 = vadd.f32 1.0, %v2133_v9  ;;  %v1159_v31 = vadd.f32 %v1158_v6, %v2864_v12  ;;  %v1791_v52 = vmul.f32 -1.442695, %v1157_v54 }
 0x15e   :  { %v2137_v19 = vpop.eup %2136  ;;  %1625 = vst [vmem:[%s3159_s3 + $0x20] sm:$0xff] %v1593_v59  ;;  %v1594_v63 = vmul.f32 %v2135_v26, %v2928_v8  ;;  %2162 = vpow2.f32 %v1787_v43  ;;  %v1160_v35 = vpop.f32.mrf.mxu0 }
 0x15f   :  { %v3018_v24 = vpop.f32.mrf.mxu1  ;;  %v2139_v30 = vpop.eup %2138  ;;  %2164 = vrcp.f32 %v1263_v23  ;;  %v1264_v25 = vadd.f32 1.0, %v2137_v19  ;;  %v1161_v28 = vadd.f32 %v1160_v35, %v2869_v21  ;;  %v1792_v57 = vmul.f32 -1.442695, %v1159_v31 }
 0x160   :  { %v2141_v32 = vpop.eup %2140  ;;  %1626 = vst [vmem:[%s3159_s3 + $0x28] sm:$0xff] %v1594_v63  ;;  %v1597_v12 = vmul.f32 %v2139_v30, %v2941_v55  ;;  %2166 = vpow2.f32 %v1788_v17  ;;  %v1162_v38 = vpop.f32.mrf.mxu0 }
 0x161   :  { %v3025_v8 = vpop.f32.mrf.mxu1  ;;  %v2143_v34 = vpop.eup %2142  ;;  %2168 = vrcp.f32 %v1264_v25  ;;  %v1267_v60 = vadd.f32 1.0, %v2141_v32  ;;  %v1163_v36 = vadd.f32 %v1162_v38, %v2874_v29  ;;  %v1795_v20 = vmul.f32 -1.442695, %v1161_v28 }
 0x162   :  { %v2145_v3 = vpop.eup %2144  ;;  %1629 = vst [vmem:[%s3159_s3 + $0x40] sm:$0xff] %v1597_v12  ;;  %v1598_v21 = vmul.f32 %v2143_v34, %v2954_v4  ;;  %2170 = vpow2.f32 %v1791_v52  ;;  %v1166_v55 = vpop.f32.mrf.mxu0 }
 0x163   :  { %v1186_v39 = vpop.f32.mrf.mxu1  ;;  %v2147_v46 = vpop.eup %2146  ;;  %2172 = vrcp.f32 %v1267_v60  ;;  %v1268_v50 = vadd.f32 1.0, %v2145_v3  ;;  %v1796_v61 = vmul.f32 -1.442695, %v1163_v36  ;;  %v1167_v27 = vadd.f32 %v1166_v55, %v2879_v37  ;;  %v1511_v55 = vld [vmem:[%s3157_s2 + $0x10] sm:$0xff] }
 0x164   :  { %v3033_v11 = vpop.eup %2148  ;;  %1630 = vst [vmem:[%s3159_s3 + $0x48] sm:$0xff] %v1598_v21  ;;  %v1601_v29 = vmul.f32 %v2147_v46, %v2967_v44  ;;  %2174 = vpow2.f32 %v1792_v57  ;;  %v1168_v4 = vpop.f32.mrf.mxu0  ;;  %v1187_v14 = vadd.f32 %v1186_v39, %v2974_v48 }
 0x165   :  { %v2151_v0 = vpop.eup %2150  ;;  %2176 = vrcp.f32 %v1268_v50  ;;  %v1799_v45 = vmul.f32 -1.442695, %v1167_v27  ;;  %v1169_v58 = vadd.f32 %v1168_v4, %v2889_v47  ;;  %v1188_v5 = vpop.f32.mrf.mxu1 }
 0x166   :  { %v3041_v18 = vpop.eup %2152  ;;  %1633 = vst [vmem:[%s3159_s3 + $0x60] sm:$0xff] %v1601_v29  ;;  %v1602_v37 = vmul.f32 %v2151_v0, %v2984_v13  ;;  %2178 = vpow2.f32 %v1795_v20  ;;  %v1170_v44 = vpop.f32.mrf.mxu0  ;;  %v1189_v13 = vadd.f32 %v1188_v5, %v2982_v1  ;;  %v1512_v29 = vld [vmem:[%s3157_s2 + $0x18] sm:$0xff] }
 0x167   :  { %v2155_v49 = vpop.eup %2154  ;;  %2180 = vpow2.f32 %v1796_v61  ;;  %v1800_v51 = vmul.f32 -1.442695, %v1169_v58  ;;  %v1171_v43 = vadd.f32 %v1170_v44, %v2899_v53  ;;  %v1190_v9 = vpop.f32.mrf.mxu1 }
 0x168   :  { %v3048_v15 = vpop.eup %2156  ;;  %1634 = vst [vmem:[%s3159_s3 + $0x68] sm:$0xff] %v1602_v37  ;;  %v1351_v47 = vadd.f32 1.0, %v2155_v49  ;;  %2182 = vpow2.f32 %v1799_v45  ;;  %v1172_v48 = vpop.f32.mrf.mxu0  ;;  %v1191_v31 = vadd.f32 %v1190_v9, %v2990_v42 }
 0x169   :  { %v2159_v7 = vpop.eup %2158  ;;  %2184 = vtanh.f32 %v1187_v14  ;;  %v1803_v53 = vmul.f32 -1.442695, %v1171_v43  ;;  %v1173_v17 = vadd.f32 %v1172_v48, %v2909_v10  ;;  %v1192_v52 = vpop.f32.mrf.mxu1  ;;  %v1515_v43 = vld [vmem:[%s3157_s2 + $0x30] sm:$0xff] }
 0x16a   :  { %v3054_v22 = vpop.eup %2160  ;;  %2186 = vrcp.f32 %v1351_v47  ;;  %v1352_v54 = vadd.f32 1.0, %v2159_v7  ;;  %v1176_v19 = vpop.f32.mrf.mxu0  ;;  %v1193_v32 = vadd.f32 %v1192_v52, %v2997_v16 }
 0x16b   :  { %v2163_v59 = vpop.eup %2162  ;;  %2188 = vpow2.f32 %v1800_v51  ;;  %v1804_v30 = vmul.f32 -1.442695, %v1173_v17  ;;  %v1177_v12 = vadd.f32 %v1176_v19, %v2922_v2  ;;  %v1196_v60 = vpop.f32.mrf.mxu1 }
 0x16c   :  { %v3057_v6 = vpop.eup %2164  ;;  %2190 = vrcp.f32 %v1352_v54  ;;  %v1355_v26 = vadd.f32 1.0, %v2163_v59  ;;  %v1178_v42 = vpop.f32.mrf.mxu0  ;;  %v1197_v61 = vadd.f32 %v1196_v60, %v3004_v62 }
 0x16d   :  { %v2167_v23 = vpop.eup %2166  ;;  %2192 = vtanh.f32 %v1189_v13  ;;  %v1807_v16 = vmul.f32 -1.442695, %v1177_v12  ;;  %v1179_v2 = vadd.f32 %v1178_v42, %v2935_v41  ;;  %v1198_v4 = vpop.f32.mrf.mxu1  ;;  %v1519_v12 = vld [vmem:[%s3157_s2 + $0x50] sm:$0xff] }
 0x16e   :  { %v3060_v1 = vpop.eup %2168  ;;  %2194 = vrcp.f32 %v1355_v26  ;;  %v1356_v63 = vadd.f32 1.0, %v2167_v23  ;;  %v1180_v39 = vpop.f32.mrf.mxu0  ;;  %v1199_v47 = vadd.f32 %v1198_v4, %v3011_v40 }
 0x16f   :  { %v2171_v35 = vpop.eup %2170  ;;  %2196 = vpow2.f32 %v1803_v53  ;;  %v1181_v41 = vadd.f32 %v1180_v39, %v2948_v33  ;;  %v1808_v5 = vmul.f32 -1.442695, %v1179_v2  ;;  %v1200_v33 = vpop.f32.mrf.mxu1 }
 0x170   :  { %v3062_v25 = vpop.eup %2172  ;;  %2198 = vrcp.f32 %v1356_v63  ;;  %v1359_v10 = vadd.f32 1.0, %v2171_v35  ;;  %v1182_v44 = vpop.f32.mrf.mxu0  ;;  %v1201_v26 = vadd.f32 %v1200_v33, %v3018_v24 }
 0x171   :  { %v2175_v28 = vpop.eup %2174  ;;  %2200 = vtanh.f32 %v1191_v31  ;;  %v1811_v13 = vmul.f32 -1.442695, %v1181_v41  ;;  %v1183_v54 = vadd.f32 %v1182_v44, %v2961_v56  ;;  %v1202_v31 = vpop.f32.mrf.mxu1 }
 0x172   :  { %v3066_v57 = vpop.eup %2176  ;;  %2202 = vrcp.f32 %v1359_v10  ;;  %v1360_v38 = vadd.f32 1.0, %v2175_v28  ;;  %v1203_v24 = vadd.f32 %v1202_v31, %v3025_v8 }
 0x173   :  { %v2179_v34 = vpop.eup %2178  ;;  %2204 = vpow2.f32 %v1804_v30  ;;  %v1812_v63 = vmul.f32 -1.442695, %v1183_v54 }
 0x174   :  { %v2181_v36 = vpop.eup %2180  ;;  %2206 = vrcp.f32 %v1360_v38  ;;  %v1363_v3 = vadd.f32 1.0, %v2179_v34 }
 0x175   :  { %v2183_v21 = vpop.eup %2182  ;;  %v1364_v20 = vadd.f32 1.0, %v2181_v36  ;;  %2208 = vtanh.f32 %v1193_v32 }
 0x176   :  { %v2185_v46 = vpop.eup %2184  ;;  %2210 = vrcp.f32 %v1363_v3  ;;  %v1447_v50 = vadd.f32 1.0, %v2183_v21 }
 0x177   :  { %v2187_v27 = vpop.eup %2186  ;;  %2212 = vrcp.f32 %v1364_v20  ;;  %v1543_v14 = vmul.f32 %v2185_v46, %v3033_v11 }
 0x178   :  { %v2189_v0 = vpop.eup %2188  ;;  %2214 = vrcp.f32 %v1447_v50  ;;  %v1527_v45 = vmul.f32 %v2187_v27, %v1511_v55  ;;  %v1523_v27 = vld [vmem:[%s3157_s2 + $0x70] sm:$0xff] }
 0x179   :  { %v2191_v58 = vpop.eup %2190  ;;  %v1448_v37 = vadd.f32 1.0, %v2189_v0  ;;  %2216 = vpow2.f32 %v1807_v16 }
 0x17a   :  { %v2193_v62 = vpop.eup %2192  ;;  %v1559_v49 = vadd.f32 %v1543_v14, %v1527_v45  ;;  %v1528_v51 = vmul.f32 %v2191_v58, %v1512_v29  ;;  %2218 = vtanh.f32 %v1197_v61 }
 0x17b   :  { %v2195_v48 = vpop.eup %2194  ;;  %2220 = vrcp.f32 %v1448_v37  ;;  %v1544_v11 = vmul.f32 %v2193_v62, %v3041_v18  ;;  %v1516_v18 = vld [vmem:[%s3157_s2 + $0x38] sm:$0xff] }
 0x17c   :  { %v2197_v7 = vpop.eup %2196  ;;  %2222 = vtanh.f32 %v1559_v49  ;;  %1607 = vst [vmem:[%s3158_s4 + $0x10] sm:$0xff] %v1559_v49  ;;  %v1531_v17 = vmul.f32 %v2195_v48, %v1515_v43 }
 0x17d   :  { %v2199_v9 = vpop.eup %2198  ;;  %v1560_v59 = vadd.f32 %v1544_v11, %v1528_v51  ;;  %v1451_v53 = vadd.f32 1.0, %v2197_v7  ;;  %2224 = vpow2.f32 %v1808_v5  ;;  %v1524_v5 = vld [vmem:[%s3157_s2 + $0x78] sm:$0xff] }
 0x17e   :  { %v2201_v40 = vpop.eup %2200  ;;  %2226 = vtanh.f32 %v1199_v47  ;;  %v1532_v10 = vmul.f32 %v2199_v9, %v1516_v18 }
 0x17f   :  { %v2203_v23 = vpop.eup %2202  ;;  %2228 = vtanh.f32 %v1560_v59  ;;  %1608 = vst [vmem:[%s3158_s4 + $0x18] sm:$0xff] %v1560_v59  ;;  %v1547_v56 = vmul.f32 %v2201_v40, %v3048_v15 }
 0x180   :  { %v2205_v19 = vpop.eup %2204  ;;  %2230 = vrcp.f32 %v1451_v53  ;;  %v1535_v36 = vmul.f32 %v2203_v23, %v1519_v12 }
 0x181   :  { %v2207_v52 = vpop.eup %2206  ;;  %v1563_v35 = vadd.f32 %v1547_v56, %v1531_v17  ;;  %v1452_v30 = vadd.f32 1.0, %v2205_v19  ;;  %2232 = vpow2.f32 %v1811_v13 }
 0x182   :  { %v2209_v28 = vpop.eup %2208  ;;  %2234 = vtanh.f32 %v1201_v26 }
 0x183   :  { %v2211_v32 = vpop.eup %2210  ;;  %2236 = vtanh.f32 %v1563_v35  ;;  %1611 = vst [vmem:[%s3158_s4 + $0x30] sm:$0xff] %v1563_v35  ;;  %v1548_v15 = vmul.f32 %v2209_v28, %v3054_v22  ;;  %v1520_v22 = vld [vmem:[%s3157_s2 + $0x58] sm:$0xff] }
 0x184   :  { %v2213_v42 = vpop.eup %2212  ;;  %2238 = vrcp.f32 %v1452_v30  ;;  %v1536_v46 = vmul.f32 %v2207_v52, %v1520_v22  ;;  %v1539_v41 = vmul.f32 %v2211_v32, %v1523_v27 }
 0x185   :  { %v2215_v38 = vpop.eup %2214  ;;  %v1564_v34 = vadd.f32 %v1548_v15, %v1532_v10  ;;  %2240 = vpow2.f32 %v1812_v63  ;;  %v1540_v47 = vmul.f32 %v2213_v42, %v1524_v5 }
 0x186   :  { %v2217_v60 = vpop.eup %2216  ;;  %2242 = vtanh.f32 %v1203_v24 }
 0x187   :  { %v2219_v8 = vpop.eup %2218  ;;  %2244 = vtanh.f32 %v1564_v34  ;;  %1612 = vst [vmem:[%s3158_s4 + $0x38] sm:$0xff] %v1564_v34  ;;  %v1455_v3 = vadd.f32 1.0, %v2217_v60 }
 0x188   :  { %v2221_v21 = vpop.eup %2220  ;;  %v1551_v20 = vmul.f32 %v2219_v8, %v3057_v6 }
 0x189   :  { %v2223_v55 = vpop.eup %2222  ;;  %2246 = vrcp.f32 %v1455_v3 }
 0x18a   :  { %v2225_v16 = vpop.eup %2224  ;;  %v1591_v2 = vmul.f32 %v2223_v55, %v2215_v38  ;;  %v1567_v39 = vadd.f32 %v1551_v20, %v1535_v36 }
 0x18b   :  { %v2227_v50 = vpop.eup %2226  ;;  %v1456_v61 = vadd.f32 1.0, %v2225_v16 }
 0x18c   :  { %v2229_v29 = vpop.eup %2228  ;;  %1623 = vst [vmem:[%s3159_s3 + $0x10] sm:$0xff] %v1591_v2  ;;  %2248 = vtanh.f32 %v1567_v39  ;;  %1615 = vst [vmem:[%s3158_s4 + $0x50] sm:$0xff] %v1567_v39  ;;  %v1552_v6 = vmul.f32 %v2227_v50, %v3060_v1 }
 0x18d   :  { %v2231_v4 = vpop.eup %2230  ;;  %v1592_v0 = vmul.f32 %v2229_v29, %v2221_v21  ;;  %2250 = vrcp.f32 %v1456_v61 }
 0x18e   :  { %v2233_v45 = vpop.eup %2232  ;;  %v1568_v14 = vadd.f32 %v1552_v6, %v1536_v46 }
 0x18f   :  { %v2235_v58 = vpop.eup %2234  ;;  %1624 = vst [vmem:[%s3159_s3 + $0x18] sm:$0xff] %v1592_v0  ;;  %v1459_v37 = vadd.f32 1.0, %v2233_v45 }
 0x190   :  { %v2237_v44 = vpop.eup %2236  ;;  %2252 = vtanh.f32 %v1568_v14  ;;  %1616 = vst [vmem:[%s3158_s4 + $0x58] sm:$0xff] %v1568_v14  ;;  %v1555_v1 = vmul.f32 %v2235_v58, %v3062_v25 }
 0x191   :  { %v2239_v62 = vpop.eup %2238  ;;  %v1595_v49 = vmul.f32 %v2237_v44, %v2231_v4  ;;  %2254 = vrcp.f32 %v1459_v37 }
 0x192   :  { %v2241_v51 = vpop.eup %2240  ;;  %v1571_v43 = vadd.f32 %v1555_v1, %v1539_v41 }
 0x193   :  { %v2243_v48 = vpop.eup %2242  ;;  %1627 = vst [vmem:[%s3159_s3 + $0x30] sm:$0xff] %v1595_v49  ;;  %v1460_v11 = vadd.f32 1.0, %v2241_v51 }
 0x194   :  { %v2245_v33 = vpop.eup %2244  ;;  %2256 = vtanh.f32 %v1571_v43  ;;  %1619 = vst [vmem:[%s3158_s4 + $0x70] sm:$0xff] %v1571_v43  ;;  %v1556_v25 = vmul.f32 %v2243_v48, %v3066_v57 }
 0x195   :  { %v1596_v7 = vmul.f32 %v2245_v33, %v2239_v62  ;;  %2258 = vrcp.f32 %v1460_v11 }
 0x196   :  { %v1572_v13 = vadd.f32 %v1556_v25, %v1540_v47  ;;  %v2247_v54 = vpop.eup %2246 }
 0x197   :  { %1628 = vst [vmem:[%s3159_s3 + $0x38] sm:$0xff] %v1596_v7 }
 0x198   :  { %2260 = vtanh.f32 %v1572_v13  ;;  %1620 = vst [vmem:[%s3158_s4 + $0x78] sm:$0xff] %v1572_v13 }
 0x199   :  { %v2249_v9 = vpop.eup %2248 }
 0x19a   :  { %v1599_v59 = vmul.f32 %v2249_v9, %v2247_v54  ;;  %v2251_v53 = vpop.eup %2250 }
 0x19c   :  { %1631 = vst [vmem:[%s3159_s3 + $0x50] sm:$0xff] %v1599_v59 }
 0x19d   :  { %v2253_v57 = vpop.eup %2252 }
 0x19e   :  { %v1600_v17 = vmul.f32 %v2253_v57, %v2251_v53  ;;  %v2255_v40 = vpop.eup %2254 }
 0x1a0   :  { %1632 = vst [vmem:[%s3159_s3 + $0x58] sm:$0xff] %v1600_v17 }
 0x1a1   :  { %v2257_v18 = vpop.eup %2256 }
 0x1a2   :  { %v1603_v26 = vmul.f32 %v2257_v18, %v2255_v40  ;;  %v2259_v23 = vpop.eup %2258 }
 0x1a4   :  { %1635 = vst [vmem:[%s3159_s3 + $0x70] sm:$0xff] %v1603_v26 }
 0x1a5   :  { %v2261_v56 = vpop.eup %2260 }
 0x1a6   :  { %v1604_v31 = vmul.f32 %v2261_v56, %v2259_v23 }
 0x1a8   :  { %1636 = vst [vmem:[%s3159_s3 + $0x78] sm:$0xff] %v1604_v31 }

</bundles_post_ra>
